<compile_context>
chip_gen: v5e
topology: v5e:2x2
jax: 0.10.0
libtpu: 0.0.40
codegen_flags: <defaults>
</compile_context>

<pallas_src>
import functools

import jax
import jax.numpy as jnp
from jax.experimental import pallas as pl
from jax.experimental.pallas import tpu as pltpu


def _lstm_gated_kernel(xp_ref, whh_t_ref, sel_dn_ref, sel_up_ref, bg_ref,
                       len_ref, out_ref, hn_ref, cn_ref, h_sc, c_sc,
                       *, tc, hidden):
    """One grid step = TC timesteps of the LSTM recurrence + block-level gate.

    xp_ref : (TC, Bb, 4H)  hoisted input projection x@W_ih^T + b (this block)
    whh_t  : (H, 4H)       recurrent weight (pre-transposed)
    sel_dn : (TC*H, TC)    block-diag copies of w_g (per-step lane reduce)
    sel_up : (TC, TC*H)    block-diag ones (per-step lane broadcast)
    bg     : (1, 1) SMEM   gate bias (scalar)
    len    : (Bb, 1) int32 sequence lengths for this batch block
    out    : (1, Bb, TC*H) lane-dense gated outputs for this block
    hn/cn  : (Bb, H)       final LSTM state for this batch block
    h_sc/c_sc : (Bb, H)    carried state scratch
    """
    tb = pl.program_id(1)
    H = hidden

    @pl.when(tb == 0)
    def _():
        h_sc[...] = jnp.zeros_like(h_sc)
        c_sc[...] = jnp.zeros_like(c_sc)

    # Load carried state / constant operands once per block.
    h = h_sc[...]                        # (Bb, H)
    c = c_sc[...]                        # (Bb, H)
    whh_t = whh_t_ref[...]               # (H, 4H)
    lens = len_ref[...]                  # (Bb, 1) int32

    t_base = tb * tc
    # Hoisted: per-step validity masks (independent of the recurrence chain).
    masks = [lens > (t_base + s) for s in range(tc)]

    outs = []
    # Static unroll over the TC timesteps (sequential recurrence).
    for step in range(tc):
        # Hot path: single MXU matmul per step (x-projection already hoisted).
        # TODO(synk): weight-stationary MXU (push W_hh once per block via
        # matmul_push_rhs / matmul_acc_lhs / matmul_pop).
        gates = xp_ref[step] + jnp.dot(h, whh_t,
                                       preferred_element_type=jnp.float32)

        # Two full-width (B, 4H) EUP pushes; PyTorch gate order: i, f, g, o.
        sig = jax.nn.sigmoid(gates)
        tah = jnp.tanh(gates)
        i = sig[:, 0:H]
        f = sig[:, H:2 * H]
        g = tah[:, 2 * H:3 * H]
        o = sig[:, 3 * H:4 * H]

        c_new = f * c + i * g
        h_new = o * jnp.tanh(c_new)

        # Packed-sequence mask: only sequences with length > t advance state.
        valid = masks[step]                      # (Bb, 1) bool
        c = jnp.where(valid, c_new, c)
        h = jnp.where(valid, h_new, h)
        # Zero-padded (unpacked) output; the gate is applied per block below.
        outs.append(jnp.where(valid, h_new, 0.0))

    # Spill carried state once per block.
    h_sc[...] = h
    c_sc[...] = c

    # Hoisted gating head, once per block on the lane-dense slab:
    #   logits[b, t] = sum_j h_out_t[b, j] * w_g[j]   (MXU, off serial path)
    h_blk = jnp.concatenate(outs, axis=-1)                       # (Bb, TC*H)
    logits = jnp.dot(h_blk, sel_dn_ref[...],
                     preferred_element_type=jnp.float32)         # (Bb, TC)
    p = jax.nn.sigmoid(logits + bg_ref[0, 0])                    # (Bb, TC)
    p_exp = jnp.dot(p, sel_up_ref[...],
                    preferred_element_type=jnp.float32)          # (Bb, TC*H)
    # Lane-dense writeback: one unmasked (Bb, TC*H) store per grid step.
    out_ref[0] = h_blk * p_exp

    @pl.when(tb == pl.num_programs(1) - 1)
    def _():
        hn_ref[...] = h
        cn_ref[...] = c


@functools.partial(jax.jit, static_argnames=("time_block",))
def gated_rnn_encoder_forward(token_ids, lengths, params, *, time_block=32):
    """token_ids: (T, B) int32, lengths: (B,) int32 (descending, as in pack)."""
    emb, w_ih, w_hh, b_ih, b_hh, w_g, b_g = (
        params["emb"], params["w_ih"], params["w_hh"],
        params["b_ih"], params["b_hh"], params["w_g"], params["b_g"])

    T, B = token_ids.shape
    H = w_hh.shape[1]

    TC = max(1, min(time_block, T))      # timesteps per grid step
    G = pl.cdiv(T, TC)
    T_pad = G * TC

    # Batch blocking: two blocks when B >= 16 so v7x's two TensorCores each
    # take half (leading grid axis is "parallel"); otherwise a single block.
    B8 = pl.cdiv(B, 8) * 8               # sublane multiple
    NB = 2 if B8 >= 16 else 1
    B_blk = pl.cdiv(B8, NB * 8) * 8
    B_pad = NB * B_blk

    # ---- Glue (plain XLA): embedding gather + hoisted input projection ----
    x_emb = jnp.take(emb, token_ids, axis=0).astype(jnp.float32)   # (T, B, E)
    bias = (b_ih + b_hh).astype(jnp.float32)                        # (4H,)
    # One big (T*B, E) @ (E, 4H) matmul — fills the MXU, off the serial path.
    x_proj = (jnp.dot(x_emb.reshape(T * B, -1),
                      w_ih.T.astype(jnp.float32),
                      preferred_element_type=jnp.float32)
              + bias).reshape(T, B, 4 * H)

    if (T_pad, B_pad) != (T, B):
        x_proj = jnp.pad(x_proj, ((0, T_pad - T), (0, B_pad - B), (0, 0)))
    len2d = jnp.pad(lengths.astype(jnp.int32),
                    (0, B_pad - B)).reshape(B_pad, 1)

    whh_t = w_hh.T.astype(jnp.float32)                          # (H, 4H)
    # Block-level gating selectors (per-step lane reduce / broadcast on MXU).
    wg_col = w_g.reshape(H, 1).astype(jnp.float32)
    sel_dn = jnp.kron(jnp.eye(TC, dtype=jnp.float32), wg_col)   # (TC*H, TC)
    sel_up = jnp.kron(jnp.eye(TC, dtype=jnp.float32),
                      jnp.ones((1, H), jnp.float32))            # (TC, TC*H)
    bg = b_g.reshape(1, 1).astype(jnp.float32)                  # (1, 1) SMEM

    grid_spec = pl.GridSpec(
        grid=(NB, G),
        in_specs=[
            pl.BlockSpec((TC, B_blk, 4 * H), lambda b, t: (t, b, 0)),  # x_proj
            pl.BlockSpec((H, 4 * H), lambda b, t: (0, 0)),             # W_hh^T
            pl.BlockSpec((TC * H, TC), lambda b, t: (0, 0)),           # sel_dn
            pl.BlockSpec((TC, TC * H), lambda b, t: (0, 0)),           # sel_up
            pl.BlockSpec(memory_space=pltpu.MemorySpace.SMEM),         # b_g
            pl.BlockSpec((B_blk, 1), lambda b, t: (b, 0)),             # lengths
        ],
        out_specs=[
            pl.BlockSpec((1, B_blk, TC * H), lambda b, t: (t, b, 0)),  # outputs
            pl.BlockSpec((B_blk, H), lambda b, t: (b, 0)),             # h_n
            pl.BlockSpec((B_blk, H), lambda b, t: (b, 0)),             # c_n
        ],
        scratch_shapes=[
            pltpu.VMEM((B_blk, H), jnp.float32),   # h state
            pltpu.VMEM((B_blk, H), jnp.float32),   # c state
        ],
    )

    kernel = functools.partial(_lstm_gated_kernel, tc=TC, hidden=H)

    out_blk, h_n, c_n = pl.pallas_call(
        kernel,
        out_shape=(
            jax.ShapeDtypeStruct((G, B_pad, TC * H), jnp.float32),
            jax.ShapeDtypeStruct((B_pad, H), jnp.float32),
            jax.ShapeDtypeStruct((B_pad, H), jnp.float32),
        ),
        grid_spec=grid_spec,
        compiler_params=pltpu.CompilerParams(
            dimension_semantics=("parallel", "arbitrary")),
    )(x_proj, whh_t, sel_dn, sel_up, bg, len2d)

    # Un-do the lane-dense packing: (G, B, TC*H) -> (T, B, H).
    # TODO(synk): on v5e with long T, fold this permutation into the consumer
    # to avoid one extra HBM pass over the outputs.
    outputs = (out_blk.reshape(G, B_pad, TC, H)
               .transpose(0, 2, 1, 3)
               .reshape(T_pad, B_pad, H)[:T, :B])

    # PyTorch state shape is (num_layers, B, H); num_layers = 1 here.
    return outputs, (h_n[:B][None], c_n[:B][None])


def _ref_forward(token_ids, lengths, params):
    """Pure-JAX reference for the same semantics (eval mode)."""
    emb, w_ih, w_hh, b_ih, b_hh, w_g, b_g = (
        params["emb"], params["w_ih"], params["w_hh"],
        params["b_ih"], params["b_hh"], params["w_g"], params["b_g"])
    T, B = token_ids.shape
    H = w_hh.shape[1]
    x_emb = jnp.take(emb, token_ids, axis=0).astype(jnp.float32)
    h = jnp.zeros((B, H), jnp.float32)
    c = jnp.zeros((B, H), jnp.float32)
    b = b_ih + b_hh
    outs = []
    for t in range(T):
        gates = x_emb[t] @ w_ih.T + h @ w_hh.T + b
        i = jax.nn.sigmoid(gates[:, 0:H])
        f = jax.nn.sigmoid(gates[:, H:2 * H])
        g = jnp.tanh(gates[:, 2 * H:3 * H])
        o = jax.nn.sigmoid(gates[:, 3 * H:4 * H])
        c_new = f * c + i * g
        h_new = o * jnp.tanh(c_new)
        valid = (lengths > t)[:, None]
        c = jnp.where(valid, c_new, c)
        h = jnp.where(valid, h_new, h)
        outs.append(jnp.where(valid, h_new, 0.0))
    outputs = jnp.stack(outs, axis=0)
    p = jax.nn.sigmoid(outputs @ w_g.reshape(H, 1) + b_g)
    return outputs * p, (h[None], c[None])


def _init_params(key, vocab_size, emb_size, hidden_size):
    ks = jax.random.split(key, 7)
    k = 1.0 / jnp.sqrt(hidden_size)
    u = lambda kk, shape: jax.random.uniform(
        kk, shape, jnp.float32, minval=-k, maxval=k)
    return {
        "emb": jax.random.normal(ks[0], (vocab_size, emb_size), jnp.float32),
        "w_ih": u(ks[1], (4 * hidden_size, emb_size)),
        "w_hh": u(ks[2], (4 * hidden_size, hidden_size)),
        "b_ih": u(ks[3], (4 * hidden_size,)),
        "b_hh": u(ks[4], (4 * hidden_size,)),
        "w_g": u(ks[5], (1, hidden_size)),
        "b_g": u(ks[6], (1,)),
    }


if __name__ == "__main__":
    # Small config: vocab=50, emb=16, hidden=32, num_layers=1.
    VOCAB, EMB, HID = 50, 16, 32

    key = jax.random.PRNGKey(0)
    kp, kx1, kx2 = jax.random.split(key, 3)
    params = _init_params(kp, VOCAB, EMB, HID)

    # Case 1: T=8, B=8 (single batch block).
    T1, B1 = 8, 8
    tok1 = jax.random.randint(kx1, (T1, B1), 0, VOCAB, dtype=jnp.int32)
    # pack_padded_sequence default requires descending-sorted lengths.
    len1 = jnp.array([8, 8, 7, 6, 5, 4, 3, 2], dtype=jnp.int32)
    out1, (h1, c1) = gated_rnn_encoder_forward(tok1, len1, params)
    jax.block_until_ready((out1, h1, c1))
    r_out1, (rh1, rc1) = _ref_forward(tok1, len1, params)
    assert jnp.allclose(out1, r_out1, atol=1e-5, rtol=1e-5)
    assert jnp.allclose(h1, rh1, atol=1e-5, rtol=1e-5)
    assert jnp.allclose(c1, rc1, atol=1e-5, rtol=1e-5)

    # Case 2: T=12, B=16 (exercises the parallel batch-block grid axis).
    T2, B2 = 12, 16
    tok2 = jax.random.randint(kx2, (T2, B2), 0, VOCAB, dtype=jnp.int32)
    len2 = jnp.array([12, 12, 11, 10, 9, 8, 8, 7, 6, 5, 5, 4, 3, 3, 2, 1],
                     dtype=jnp.int32)
    out2, (h2, c2) = gated_rnn_encoder_forward(tok2, len2, params)
    jax.block_until_ready((out2, h2, c2))
    r_out2, (rh2, rc2) = _ref_forward(tok2, len2, params)
    assert jnp.allclose(out2, r_out2, atol=1e-5, rtol=1e-5)
    assert jnp.allclose(h2, rh2, atol=1e-5, rtol=1e-5)
    assert jnp.allclose(c2, rc2, atol=1e-5, rtol=1e-5)

    print("KERNEL_OK")
</pallas_src>

<mosaic_0001>
module attributes {stable_mosaic.version = 11 : i64} {
  func.func @_lstm_gated_kernel(%arg0: i32, %arg1: i32, %arg2: memref<8x8x128xf32, #tpu.memory_space<vmem>>, %arg3: memref<32x128xf32, #tpu.memory_space<vmem>>, %arg4: memref<256x8xf32, #tpu.memory_space<vmem>>, %arg5: memref<8x256xf32, #tpu.memory_space<vmem>>, %arg6: memref<1x1xf32, #tpu.memory_space<smem>>, %arg7: memref<8x1xi32, #tpu.memory_space<vmem>>, %arg8: memref<1x8x256xf32, #tpu.memory_space<vmem>>, %arg9: memref<8x32xf32, #tpu.memory_space<vmem>>, %arg10: memref<8x32xf32, #tpu.memory_space<vmem>>, %arg11: memref<8x32xf32, #tpu.memory_space<vmem>>, %arg12: memref<8x32xf32, #tpu.memory_space<vmem>>) attributes {dimension_semantics = [#tpu.dimension_semantics<parallel>, #tpu.dimension_semantics<arbitrary>], iteration_bounds = array<i64: 1, 1>, scalar_prefetch = 0 : i64, scratch_operands = 2 : i64, tpu.core_type = #tpu.core_type<tc>, window_params = [{transform_indices = @transform_0, window_bounds = array<i64: 8, 8, 128>}, {pipeline_mode = #tpu.pipeline_mode<synchronous>, transform_indices = @transform_1, window_bounds = array<i64: 32, 128>}, {pipeline_mode = #tpu.pipeline_mode<synchronous>, transform_indices = @transform_2, window_bounds = array<i64: 256, 8>}, {pipeline_mode = #tpu.pipeline_mode<synchronous>, transform_indices = @transform_3, window_bounds = array<i64: 8, 256>}, {transform_indices = @transform_4, window_bounds = array<i64: 1, 1>}, {transform_indices = @transform_5, window_bounds = array<i64: 8, 1>}, {transform_indices = @transform_6, window_bounds = array<i64: 1, 8, 256>}, {transform_indices = @transform_7, window_bounds = array<i64: 8, 32>}, {transform_indices = @transform_8, window_bounds = array<i64: 8, 32>}]} {
    %c0_i32 = arith.constant 0 : i32
    %0 = arith.cmpi eq, %arg1, %c0_i32 : i32
    %1 = arith.extui %0 : i1 to i32
    %c0_i32_0 = arith.constant 0 : i32
    %2 = arith.cmpi ne, %1, %c0_i32_0 : i32
    scf.if %2 {
      %cst_67 = arith.constant 0.000000e+00 : f32
      %286 = vector.broadcast %cst_67 : f32 to vector<8x32xf32>
      %c0_68 = arith.constant 0 : index
      %c0_69 = arith.constant 0 : index
      %287 = vector.load %arg11[%c0_68, %c0_69] : memref<8x32xf32, #tpu.memory_space<vmem>>, vector<8x32xf32>
      tpu.vector_store %arg11[%c0_68, %c0_69], %286 {strides = array<i32>} : memref<8x32xf32, #tpu.memory_space<vmem>>, vector<8x32xf32>,
      %cst_70 = arith.constant 0.000000e+00 : f32
      %288 = vector.broadcast %cst_70 : f32 to vector<8x32xf32>
      %c0_71 = arith.constant 0 : index
      %c0_72 = arith.constant 0 : index
      %289 = vector.load %arg12[%c0_71, %c0_72] : memref<8x32xf32, #tpu.memory_space<vmem>>, vector<8x32xf32>
      tpu.vector_store %arg12[%c0_71, %c0_72], %288 {strides = array<i32>} : memref<8x32xf32, #tpu.memory_space<vmem>>, vector<8x32xf32>,
    } else {
    }
    %c0 = arith.constant 0 : index
    %c0_1 = arith.constant 0 : index
    %3 = vector.load %arg11[%c0, %c0_1] : memref<8x32xf32, #tpu.memory_space<vmem>>, vector<8x32xf32>
    %c0_2 = arith.constant 0 : index
    %c0_3 = arith.constant 0 : index
    %4 = vector.load %arg12[%c0_2, %c0_3] : memref<8x32xf32, #tpu.memory_space<vmem>>, vector<8x32xf32>
    %c0_4 = arith.constant 0 : index
    %c0_5 = arith.constant 0 : index
    %5 = vector.load %arg3[%c0_4, %c0_5] : memref<32x128xf32, #tpu.memory_space<vmem>>, vector<32x128xf32>
    %c0_6 = arith.constant 0 : index
    %c0_7 = arith.constant 0 : index
    %6 = vector.load %arg7[%c0_6, %c0_7] : memref<8x1xi32, #tpu.memory_space<vmem>>, vector<8x1xi32>
    %c8_i32 = arith.constant 8 : i32
    %7 = arith.muli %arg1, %c8_i32 : i32
    %c0_i32_8 = arith.constant 0 : i32
    %8 = arith.addi %7, %c0_i32_8 : i32
    %9 = vector.broadcast %8 : i32 to vector<8x1xi32>
    %10 = arith.cmpi sgt, %6, %9 : vector<8x1xi32>
    %c1_i32 = arith.constant 1 : i32
    %11 = arith.addi %7, %c1_i32 : i32
    %12 = vector.broadcast %11 : i32 to vector<8x1xi32>
    %13 = arith.cmpi sgt, %6, %12 : vector<8x1xi32>
    %c2_i32 = arith.constant 2 : i32
    %14 = arith.addi %7, %c2_i32 : i32
    %15 = vector.broadcast %14 : i32 to vector<8x1xi32>
    %16 = arith.cmpi sgt, %6, %15 : vector<8x1xi32>
    %c3_i32 = arith.constant 3 : i32
    %17 = arith.addi %7, %c3_i32 : i32
    %18 = vector.broadcast %17 : i32 to vector<8x1xi32>
    %19 = arith.cmpi sgt, %6, %18 : vector<8x1xi32>
    %c4_i32 = arith.constant 4 : i32
    %20 = arith.addi %7, %c4_i32 : i32
    %21 = vector.broadcast %20 : i32 to vector<8x1xi32>
    %22 = arith.cmpi sgt, %6, %21 : vector<8x1xi32>
    %c5_i32 = arith.constant 5 : i32
    %23 = arith.addi %7, %c5_i32 : i32
    %24 = vector.broadcast %23 : i32 to vector<8x1xi32>
    %25 = arith.cmpi sgt, %6, %24 : vector<8x1xi32>
    %c6_i32 = arith.constant 6 : i32
    %26 = arith.addi %7, %c6_i32 : i32
    %27 = vector.broadcast %26 : i32 to vector<8x1xi32>
    %28 = arith.cmpi sgt, %6, %27 : vector<8x1xi32>
    %c7_i32 = arith.constant 7 : i32
    %29 = arith.addi %7, %c7_i32 : i32
    %30 = vector.broadcast %29 : i32 to vector<8x1xi32>
    %31 = arith.cmpi sgt, %6, %30 : vector<8x1xi32>
    %c0_9 = arith.constant 0 : index
    %c0_10 = arith.constant 0 : index
    %c0_11 = arith.constant 0 : index
    %32 = vector.load %arg2[%c0_9, %c0_10, %c0_11] : memref<8x8x128xf32, #tpu.memory_space<vmem>>, vector<1x8x128xf32>
    %33 = vector.shape_cast %32 : vector<1x8x128xf32> to vector<8x128xf32>
    %cst = arith.constant dense<0.000000e+00> : vector<8x128xf32>
    %34 = tpu.matmul %3, %5, %cst {dimension_numbers = #tpu.dot_dimension_numbers<[1], [0], [0], [1], [0, 0, 1, 1], [], []>} : vector<8x32xf32>, vector<32x128xf32>, vector<8x128xf32> -> vector<8x128xf32>
    %35 = arith.addf %33, %34 : vector<8x128xf32>
    %36 = arith.negf %35 : vector<8x128xf32>
    %37 = math.exp %36 : vector<8x128xf32>
    %cst_12 = arith.constant 1.000000e+00 : f32
    %38 = vector.broadcast %cst_12 : f32 to vector<8x128xf32>
    %39 = arith.addf %38, %37 : vector<8x128xf32>
    %40 = arith.divf %38, %39 : vector<8x128xf32>
    %41 = math.tanh %35 : vector<8x128xf32>
    %42 = vector.extract_strided_slice %40 {offsets = [0, 0], sizes = [8, 32], strides = [1, 1]} : vector<8x128xf32> to vector<8x32xf32>
    %43 = vector.extract_strided_slice %40 {offsets = [0, 32], sizes = [8, 32], strides = [1, 1]} : vector<8x128xf32> to vector<8x32xf32>
    %44 = vector.extract_strided_slice %41 {offsets = [0, 64], sizes = [8, 32], strides = [1, 1]} : vector<8x128xf32> to vector<8x32xf32>
    %45 = vector.extract_strided_slice %40 {offsets = [0, 96], sizes = [8, 32], strides = [1, 1]} : vector<8x128xf32> to vector<8x32xf32>
    %46 = arith.mulf %43, %4 : vector<8x32xf32>
    %47 = arith.mulf %42, %44 : vector<8x32xf32>
    %48 = arith.addf %46, %47 : vector<8x32xf32>
    %49 = math.tanh %48 : vector<8x32xf32>
    %50 = arith.mulf %45, %49 : vector<8x32xf32>
    %51 = vector.shape_cast %10 : vector<8x1xi1> to vector<8x1xi1>
    %52 = vector.broadcast %51 : vector<8x1xi1> to vector<8x32xi1>
    %53 = arith.select %52, %48, %4 : vector<8x32xi1>, vector<8x32xf32>
    %54 = vector.shape_cast %10 : vector<8x1xi1> to vector<8x1xi1>
    %55 = vector.broadcast %54 : vector<8x1xi1> to vector<8x32xi1>
    %56 = arith.select %55, %50, %3 : vector<8x32xi1>, vector<8x32xf32>
    %cst_13 = arith.constant 0.000000e+00 : f32
    %57 = vector.shape_cast %10 : vector<8x1xi1> to vector<8x1xi1>
    %58 = vector.broadcast %57 : vector<8x1xi1> to vector<8x32xi1>
    %59 = vector.broadcast %cst_13 : f32 to vector<8x32xf32>
    %60 = arith.select %58, %50, %59 : vector<8x32xi1>, vector<8x32xf32>
    %c1 = arith.constant 1 : index
    %c0_14 = arith.constant 0 : index
    %c0_15 = arith.constant 0 : index
    %61 = vector.load %arg2[%c1, %c0_14, %c0_15] : memref<8x8x128xf32, #tpu.memory_space<vmem>>, vector<1x8x128xf32>
    %62 = vector.shape_cast %61 : vector<1x8x128xf32> to vector<8x128xf32>
    %cst_16 = arith.constant dense<0.000000e+00> : vector<8x128xf32>
    %63 = tpu.matmul %56, %5, %cst_16 {dimension_numbers = #tpu.dot_dimension_numbers<[1], [0], [0], [1], [0, 0, 1, 1], [], []>} : vector<8x32xf32>, vector<32x128xf32>, vector<8x128xf32> -> vector<8x128xf32>
    %64 = arith.addf %62, %63 : vector<8x128xf32>
    %65 = arith.negf %64 : vector<8x128xf32>
    %66 = math.exp %65 : vector<8x128xf32>
    %cst_17 = arith.constant 1.000000e+00 : f32
    %67 = vector.broadcast %cst_17 : f32 to vector<8x128xf32>
    %68 = arith.addf %67, %66 : vector<8x128xf32>
    %69 = arith.divf %67, %68 : vector<8x128xf32>
    %70 = math.tanh %64 : vector<8x128xf32>
    %71 = vector.extract_strided_slice %69 {offsets = [0, 0], sizes = [8, 32], strides = [1, 1]} : vector<8x128xf32> to vector<8x32xf32>
    %72 = vector.extract_strided_slice %69 {offsets = [0, 32], sizes = [8, 32], strides = [1, 1]} : vector<8x128xf32> to vector<8x32xf32>
    %73 = vector.extract_strided_slice %70 {offsets = [0, 64], sizes = [8, 32], strides = [1, 1]} : vector<8x128xf32> to vector<8x32xf32>
    %74 = vector.extract_strided_slice %69 {offsets = [0, 96], sizes = [8, 32], strides = [1, 1]} : vector<8x128xf32> to vector<8x32xf32>
    %75 = arith.mulf %72, %53 : vector<8x32xf32>
    %76 = arith.mulf %71, %73 : vector<8x32xf32>
    %77 = arith.addf %75, %76 : vector<8x32xf32>
    %78 = math.tanh %77 : vector<8x32xf32>
    %79 = arith.mulf %74, %78 : vector<8x32xf32>
    %80 = vector.shape_cast %13 : vector<8x1xi1> to vector<8x1xi1>
    %81 = vector.broadcast %80 : vector<8x1xi1> to vector<8x32xi1>
    %82 = arith.select %81, %77, %53 : vector<8x32xi1>, vector<8x32xf32>
    %83 = vector.shape_cast %13 : vector<8x1xi1> to vector<8x1xi1>
    %84 = vector.broadcast %83 : vector<8x1xi1> to vector<8x32xi1>
    %85 = arith.select %84, %79, %56 : vector<8x32xi1>, vector<8x32xf32>
    %cst_18 = arith.constant 0.000000e+00 : f32
    %86 = vector.shape_cast %13 : vector<8x1xi1> to vector<8x1xi1>
    %87 = vector.broadcast %86 : vector<8x1xi1> to vector<8x32xi1>
    %88 = vector.broadcast %cst_18 : f32 to vector<8x32xf32>
    %89 = arith.select %87, %79, %88 : vector<8x32xi1>, vector<8x32xf32>
    %c2 = arith.constant 2 : index
    %c0_19 = arith.constant 0 : index
    %c0_20 = arith.constant 0 : index
    %90 = vector.load %arg2[%c2, %c0_19, %c0_20] : memref<8x8x128xf32, #tpu.memory_space<vmem>>, vector<1x8x128xf32>
    %91 = vector.shape_cast %90 : vector<1x8x128xf32> to vector<8x128xf32>
    %cst_21 = arith.constant dense<0.000000e+00> : vector<8x128xf32>
    %92 = tpu.matmul %85, %5, %cst_21 {dimension_numbers = #tpu.dot_dimension_numbers<[1], [0], [0], [1], [0, 0, 1, 1], [], []>} : vector<8x32xf32>, vector<32x128xf32>, vector<8x128xf32> -> vector<8x128xf32>
    %93 = arith.addf %91, %92 : vector<8x128xf32>
    %94 = arith.negf %93 : vector<8x128xf32>
    %95 = math.exp %94 : vector<8x128xf32>
    %cst_22 = arith.constant 1.000000e+00 : f32
    %96 = vector.broadcast %cst_22 : f32 to vector<8x128xf32>
    %97 = arith.addf %96, %95 : vector<8x128xf32>
    %98 = arith.divf %96, %97 : vector<8x128xf32>
    %99 = math.tanh %93 : vector<8x128xf32>
    %100 = vector.extract_strided_slice %98 {offsets = [0, 0], sizes = [8, 32], strides = [1, 1]} : vector<8x128xf32> to vector<8x32xf32>
    %101 = vector.extract_strided_slice %98 {offsets = [0, 32], sizes = [8, 32], strides = [1, 1]} : vector<8x128xf32> to vector<8x32xf32>
    %102 = vector.extract_strided_slice %99 {offsets = [0, 64], sizes = [8, 32], strides = [1, 1]} : vector<8x128xf32> to vector<8x32xf32>
    %103 = vector.extract_strided_slice %98 {offsets = [0, 96], sizes = [8, 32], strides = [1, 1]} : vector<8x128xf32> to vector<8x32xf32>
    %104 = arith.mulf %101, %82 : vector<8x32xf32>
    %105 = arith.mulf %100, %102 : vector<8x32xf32>
    %106 = arith.addf %104, %105 : vector<8x32xf32>
    %107 = math.tanh %106 : vector<8x32xf32>
    %108 = arith.mulf %103, %107 : vector<8x32xf32>
    %109 = vector.shape_cast %16 : vector<8x1xi1> to vector<8x1xi1>
    %110 = vector.broadcast %109 : vector<8x1xi1> to vector<8x32xi1>
    %111 = arith.select %110, %106, %82 : vector<8x32xi1>, vector<8x32xf32>
    %112 = vector.shape_cast %16 : vector<8x1xi1> to vector<8x1xi1>
    %113 = vector.broadcast %112 : vector<8x1xi1> to vector<8x32xi1>
    %114 = arith.select %113, %108, %85 : vector<8x32xi1>, vector<8x32xf32>
    %cst_23 = arith.constant 0.000000e+00 : f32
    %115 = vector.shape_cast %16 : vector<8x1xi1> to vector<8x1xi1>
    %116 = vector.broadcast %115 : vector<8x1xi1> to vector<8x32xi1>
    %117 = vector.broadcast %cst_23 : f32 to vector<8x32xf32>
    %118 = arith.select %116, %108, %117 : vector<8x32xi1>, vector<8x32xf32>
    %c3 = arith.constant 3 : index
    %c0_24 = arith.constant 0 : index
    %c0_25 = arith.constant 0 : index
    %119 = vector.load %arg2[%c3, %c0_24, %c0_25] : memref<8x8x128xf32, #tpu.memory_space<vmem>>, vector<1x8x128xf32>
    %120 = vector.shape_cast %119 : vector<1x8x128xf32> to vector<8x128xf32>
    %cst_26 = arith.constant dense<0.000000e+00> : vector<8x128xf32>
    %121 = tpu.matmul %114, %5, %cst_26 {dimension_numbers = #tpu.dot_dimension_numbers<[1], [0], [0], [1], [0, 0, 1, 1], [], []>} : vector<8x32xf32>, vector<32x128xf32>, vector<8x128xf32> -> vector<8x128xf32>
    %122 = arith.addf %120, %121 : vector<8x128xf32>
    %123 = arith.negf %122 : vector<8x128xf32>
    %124 = math.exp %123 : vector<8x128xf32>
    %cst_27 = arith.constant 1.000000e+00 : f32
    %125 = vector.broadcast %cst_27 : f32 to vector<8x128xf32>
    %126 = arith.addf %125, %124 : vector<8x128xf32>
    %127 = arith.divf %125, %126 : vector<8x128xf32>
    %128 = math.tanh %122 : vector<8x128xf32>
    %129 = vector.extract_strided_slice %127 {offsets = [0, 0], sizes = [8, 32], strides = [1, 1]} : vector<8x128xf32> to vector<8x32xf32>
    %130 = vector.extract_strided_slice %127 {offsets = [0, 32], sizes = [8, 32], strides = [1, 1]} : vector<8x128xf32> to vector<8x32xf32>
    %131 = vector.extract_strided_slice %128 {offsets = [0, 64], sizes = [8, 32], strides = [1, 1]} : vector<8x128xf32> to vector<8x32xf32>
    %132 = vector.extract_strided_slice %127 {offsets = [0, 96], sizes = [8, 32], strides = [1, 1]} : vector<8x128xf32> to vector<8x32xf32>
    %133 = arith.mulf %130, %111 : vector<8x32xf32>
    %134 = arith.mulf %129, %131 : vector<8x32xf32>
    %135 = arith.addf %133, %134 : vector<8x32xf32>
    %136 = math.tanh %135 : vector<8x32xf32>
    %137 = arith.mulf %132, %136 : vector<8x32xf32>
    %138 = vector.shape_cast %19 : vector<8x1xi1> to vector<8x1xi1>
    %139 = vector.broadcast %138 : vector<8x1xi1> to vector<8x32xi1>
    %140 = arith.select %139, %135, %111 : vector<8x32xi1>, vector<8x32xf32>
    %141 = vector.shape_cast %19 : vector<8x1xi1> to vector<8x1xi1>
    %142 = vector.broadcast %141 : vector<8x1xi1> to vector<8x32xi1>
    %143 = arith.select %142, %137, %114 : vector<8x32xi1>, vector<8x32xf32>
    %cst_28 = arith.constant 0.000000e+00 : f32
    %144 = vector.shape_cast %19 : vector<8x1xi1> to vector<8x1xi1>
    %145 = vector.broadcast %144 : vector<8x1xi1> to vector<8x32xi1>
    %146 = vector.broadcast %cst_28 : f32 to vector<8x32xf32>
    %147 = arith.select %145, %137, %146 : vector<8x32xi1>, vector<8x32xf32>
    %c4 = arith.constant 4 : index
    %c0_29 = arith.constant 0 : index
    %c0_30 = arith.constant 0 : index
    %148 = vector.load %arg2[%c4, %c0_29, %c0_30] : memref<8x8x128xf32, #tpu.memory_space<vmem>>, vector<1x8x128xf32>
    %149 = vector.shape_cast %148 : vector<1x8x128xf32> to vector<8x128xf32>
    %cst_31 = arith.constant dense<0.000000e+00> : vector<8x128xf32>
    %150 = tpu.matmul %143, %5, %cst_31 {dimension_numbers = #tpu.dot_dimension_numbers<[1], [0], [0], [1], [0, 0, 1, 1], [], []>} : vector<8x32xf32>, vector<32x128xf32>, vector<8x128xf32> -> vector<8x128xf32>
    %151 = arith.addf %149, %150 : vector<8x128xf32>
    %152 = arith.negf %151 : vector<8x128xf32>
    %153 = math.exp %152 : vector<8x128xf32>
    %cst_32 = arith.constant 1.000000e+00 : f32
    %154 = vector.broadcast %cst_32 : f32 to vector<8x128xf32>
    %155 = arith.addf %154, %153 : vector<8x128xf32>
    %156 = arith.divf %154, %155 : vector<8x128xf32>
    %157 = math.tanh %151 : vector<8x128xf32>
    %158 = vector.extract_strided_slice %156 {offsets = [0, 0], sizes = [8, 32], strides = [1, 1]} : vector<8x128xf32> to vector<8x32xf32>
    %159 = vector.extract_strided_slice %156 {offsets = [0, 32], sizes = [8, 32], strides = [1, 1]} : vector<8x128xf32> to vector<8x32xf32>
    %160 = vector.extract_strided_slice %157 {offsets = [0, 64], sizes = [8, 32], strides = [1, 1]} : vector<8x128xf32> to vector<8x32xf32>
    %161 = vector.extract_strided_slice %156 {offsets = [0, 96], sizes = [8, 32], strides = [1, 1]} : vector<8x128xf32> to vector<8x32xf32>
    %162 = arith.mulf %159, %140 : vector<8x32xf32>
    %163 = arith.mulf %158, %160 : vector<8x32xf32>
    %164 = arith.addf %162, %163 : vector<8x32xf32>
    %165 = math.tanh %164 : vector<8x32xf32>
    %166 = arith.mulf %161, %165 : vector<8x32xf32>
    %167 = vector.shape_cast %22 : vector<8x1xi1> to vector<8x1xi1>
    %168 = vector.broadcast %167 : vector<8x1xi1> to vector<8x32xi1>
    %169 = arith.select %168, %164, %140 : vector<8x32xi1>, vector<8x32xf32>
    %170 = vector.shape_cast %22 : vector<8x1xi1> to vector<8x1xi1>
    %171 = vector.broadcast %170 : vector<8x1xi1> to vector<8x32xi1>
    %172 = arith.select %171, %166, %143 : vector<8x32xi1>, vector<8x32xf32>
    %cst_33 = arith.constant 0.000000e+00 : f32
    %173 = vector.shape_cast %22 : vector<8x1xi1> to vector<8x1xi1>
    %174 = vector.broadcast %173 : vector<8x1xi1> to vector<8x32xi1>
    %175 = vector.broadcast %cst_33 : f32 to vector<8x32xf32>
    %176 = arith.select %174, %166, %175 : vector<8x32xi1>, vector<8x32xf32>
    %c5 = arith.constant 5 : index
    %c0_34 = arith.constant 0 : index
    %c0_35 = arith.constant 0 : index
    %177 = vector.load %arg2[%c5, %c0_34, %c0_35] : memref<8x8x128xf32, #tpu.memory_space<vmem>>, vector<1x8x128xf32>
    %178 = vector.shape_cast %177 : vector<1x8x128xf32> to vector<8x128xf32>
    %cst_36 = arith.constant dense<0.000000e+00> : vector<8x128xf32>
    %179 = tpu.matmul %172, %5, %cst_36 {dimension_numbers = #tpu.dot_dimension_numbers<[1], [0], [0], [1], [0, 0, 1, 1], [], []>} : vector<8x32xf32>, vector<32x128xf32>, vector<8x128xf32> -> vector<8x128xf32>
    %180 = arith.addf %178, %179 : vector<8x128xf32>
    %181 = arith.negf %180 : vector<8x128xf32>
    %182 = math.exp %181 : vector<8x128xf32>
    %cst_37 = arith.constant 1.000000e+00 : f32
    %183 = vector.broadcast %cst_37 : f32 to vector<8x128xf32>
    %184 = arith.addf %183, %182 : vector<8x128xf32>
    %185 = arith.divf %183, %184 : vector<8x128xf32>
    %186 = math.tanh %180 : vector<8x128xf32>
    %187 = vector.extract_strided_slice %185 {offsets = [0, 0], sizes = [8, 32], strides = [1, 1]} : vector<8x128xf32> to vector<8x32xf32>
    %188 = vector.extract_strided_slice %185 {offsets = [0, 32], sizes = [8, 32], strides = [1, 1]} : vector<8x128xf32> to vector<8x32xf32>
    %189 = vector.extract_strided_slice %186 {offsets = [0, 64], sizes = [8, 32], strides = [1, 1]} : vector<8x128xf32> to vector<8x32xf32>
    %190 = vector.extract_strided_slice %185 {offsets = [0, 96], sizes = [8, 32], strides = [1, 1]} : vector<8x128xf32> to vector<8x32xf32>
    %191 = arith.mulf %188, %169 : vector<8x32xf32>
    %192 = arith.mulf %187, %189 : vector<8x32xf32>
    %193 = arith.addf %191, %192 : vector<8x32xf32>
    %194 = math.tanh %193 : vector<8x32xf32>
    %195 = arith.mulf %190, %194 : vector<8x32xf32>
    %196 = vector.shape_cast %25 : vector<8x1xi1> to vector<8x1xi1>
    %197 = vector.broadcast %196 : vector<8x1xi1> to vector<8x32xi1>
    %198 = arith.select %197, %193, %169 : vector<8x32xi1>, vector<8x32xf32>
    %199 = vector.shape_cast %25 : vector<8x1xi1> to vector<8x1xi1>
    %200 = vector.broadcast %199 : vector<8x1xi1> to vector<8x32xi1>
    %201 = arith.select %200, %195, %172 : vector<8x32xi1>, vector<8x32xf32>
    %cst_38 = arith.constant 0.000000e+00 : f32
    %202 = vector.shape_cast %25 : vector<8x1xi1> to vector<8x1xi1>
    %203 = vector.broadcast %202 : vector<8x1xi1> to vector<8x32xi1>
    %204 = vector.broadcast %cst_38 : f32 to vector<8x32xf32>
    %205 = arith.select %203, %195, %204 : vector<8x32xi1>, vector<8x32xf32>
    %c6 = arith.constant 6 : index
    %c0_39 = arith.constant 0 : index
    %c0_40 = arith.constant 0 : index
    %206 = vector.load %arg2[%c6, %c0_39, %c0_40] : memref<8x8x128xf32, #tpu.memory_space<vmem>>, vector<1x8x128xf32>
    %207 = vector.shape_cast %206 : vector<1x8x128xf32> to vector<8x128xf32>
    %cst_41 = arith.constant dense<0.000000e+00> : vector<8x128xf32>
    %208 = tpu.matmul %201, %5, %cst_41 {dimension_numbers = #tpu.dot_dimension_numbers<[1], [0], [0], [1], [0, 0, 1, 1], [], []>} : vector<8x32xf32>, vector<32x128xf32>, vector<8x128xf32> -> vector<8x128xf32>
    %209 = arith.addf %207, %208 : vector<8x128xf32>
    %210 = arith.negf %209 : vector<8x128xf32>
    %211 = math.exp %210 : vector<8x128xf32>
    %cst_42 = arith.constant 1.000000e+00 : f32
    %212 = vector.broadcast %cst_42 : f32 to vector<8x128xf32>
    %213 = arith.addf %212, %211 : vector<8x128xf32>
    %214 = arith.divf %212, %213 : vector<8x128xf32>
    %215 = math.tanh %209 : vector<8x128xf32>
    %216 = vector.extract_strided_slice %214 {offsets = [0, 0], sizes = [8, 32], strides = [1, 1]} : vector<8x128xf32> to vector<8x32xf32>
    %217 = vector.extract_strided_slice %214 {offsets = [0, 32], sizes = [8, 32], strides = [1, 1]} : vector<8x128xf32> to vector<8x32xf32>
    %218 = vector.extract_strided_slice %215 {offsets = [0, 64], sizes = [8, 32], strides = [1, 1]} : vector<8x128xf32> to vector<8x32xf32>
    %219 = vector.extract_strided_slice %214 {offsets = [0, 96], sizes = [8, 32], strides = [1, 1]} : vector<8x128xf32> to vector<8x32xf32>
    %220 = arith.mulf %217, %198 : vector<8x32xf32>
    %221 = arith.mulf %216, %218 : vector<8x32xf32>
    %222 = arith.addf %220, %221 : vector<8x32xf32>
    %223 = math.tanh %222 : vector<8x32xf32>
    %224 = arith.mulf %219, %223 : vector<8x32xf32>
    %225 = vector.shape_cast %28 : vector<8x1xi1> to vector<8x1xi1>
    %226 = vector.broadcast %225 : vector<8x1xi1> to vector<8x32xi1>
    %227 = arith.select %226, %222, %198 : vector<8x32xi1>, vector<8x32xf32>
    %228 = vector.shape_cast %28 : vector<8x1xi1> to vector<8x1xi1>
    %229 = vector.broadcast %228 : vector<8x1xi1> to vector<8x32xi1>
    %230 = arith.select %229, %224, %201 : vector<8x32xi1>, vector<8x32xf32>
    %cst_43 = arith.constant 0.000000e+00 : f32
    %231 = vector.shape_cast %28 : vector<8x1xi1> to vector<8x1xi1>
    %232 = vector.broadcast %231 : vector<8x1xi1> to vector<8x32xi1>
    %233 = vector.broadcast %cst_43 : f32 to vector<8x32xf32>
    %234 = arith.select %232, %224, %233 : vector<8x32xi1>, vector<8x32xf32>
    %c7 = arith.constant 7 : index
    %c0_44 = arith.constant 0 : index
    %c0_45 = arith.constant 0 : index
    %235 = vector.load %arg2[%c7, %c0_44, %c0_45] : memref<8x8x128xf32, #tpu.memory_space<vmem>>, vector<1x8x128xf32>
    %236 = vector.shape_cast %235 : vector<1x8x128xf32> to vector<8x128xf32>
    %cst_46 = arith.constant dense<0.000000e+00> : vector<8x128xf32>
    %237 = tpu.matmul %230, %5, %cst_46 {dimension_numbers = #tpu.dot_dimension_numbers<[1], [0], [0], [1], [0, 0, 1, 1], [], []>} : vector<8x32xf32>, vector<32x128xf32>, vector<8x128xf32> -> vector<8x128xf32>
    %238 = arith.addf %236, %237 : vector<8x128xf32>
    %239 = arith.negf %238 : vector<8x128xf32>
    %240 = math.exp %239 : vector<8x128xf32>
    %cst_47 = arith.constant 1.000000e+00 : f32
    %241 = vector.broadcast %cst_47 : f32 to vector<8x128xf32>
    %242 = arith.addf %241, %240 : vector<8x128xf32>
    %243 = arith.divf %241, %242 : vector<8x128xf32>
    %244 = math.tanh %238 : vector<8x128xf32>
    %245 = vector.extract_strided_slice %243 {offsets = [0, 0], sizes = [8, 32], strides = [1, 1]} : vector<8x128xf32> to vector<8x32xf32>
    %246 = vector.extract_strided_slice %243 {offsets = [0, 32], sizes = [8, 32], strides = [1, 1]} : vector<8x128xf32> to vector<8x32xf32>
    %247 = vector.extract_strided_slice %244 {offsets = [0, 64], sizes = [8, 32], strides = [1, 1]} : vector<8x128xf32> to vector<8x32xf32>
    %248 = vector.extract_strided_slice %243 {offsets = [0, 96], sizes = [8, 32], strides = [1, 1]} : vector<8x128xf32> to vector<8x32xf32>
    %249 = arith.mulf %246, %227 : vector<8x32xf32>
    %250 = arith.mulf %245, %247 : vector<8x32xf32>
    %251 = arith.addf %249, %250 : vector<8x32xf32>
    %252 = math.tanh %251 : vector<8x32xf32>
    %253 = arith.mulf %248, %252 : vector<8x32xf32>
    %254 = vector.shape_cast %31 : vector<8x1xi1> to vector<8x1xi1>
    %255 = vector.broadcast %254 : vector<8x1xi1> to vector<8x32xi1>
    %256 = arith.select %255, %251, %227 : vector<8x32xi1>, vector<8x32xf32>
    %257 = vector.shape_cast %31 : vector<8x1xi1> to vector<8x1xi1>
    %258 = vector.broadcast %257 : vector<8x1xi1> to vector<8x32xi1>
    %259 = arith.select %258, %253, %230 : vector<8x32xi1>, vector<8x32xf32>
    %cst_48 = arith.constant 0.000000e+00 : f32
    %260 = vector.shape_cast %31 : vector<8x1xi1> to vector<8x1xi1>
    %261 = vector.broadcast %260 : vector<8x1xi1> to vector<8x32xi1>
    %262 = vector.broadcast %cst_48 : f32 to vector<8x32xf32>
    %263 = arith.select %261, %253, %262 : vector<8x32xi1>, vector<8x32xf32>
    %c0_49 = arith.constant 0 : index
    %c0_50 = arith.constant 0 : index
    %264 = vector.load %arg11[%c0_49, %c0_50] : memref<8x32xf32, #tpu.memory_space<vmem>>, vector<8x32xf32>
    tpu.vector_store %arg11[%c0_49, %c0_50], %259 {strides = array<i32>} : memref<8x32xf32, #tpu.memory_space<vmem>>, vector<8x32xf32>,
    %c0_51 = arith.constant 0 : index
    %c0_52 = arith.constant 0 : index
    %265 = vector.load %arg12[%c0_51, %c0_52] : memref<8x32xf32, #tpu.memory_space<vmem>>, vector<8x32xf32>
    tpu.vector_store %arg12[%c0_51, %c0_52], %256 {strides = array<i32>} : memref<8x32xf32, #tpu.memory_space<vmem>>, vector<8x32xf32>,
    %266 = tpu.concatenate %60, %89, %118, %147, %176, %205, %234, %263 in 1 : vector<8x32xf32>, vector<8x32xf32>, vector<8x32xf32>, vector<8x32xf32>, vector<8x32xf32>, vector<8x32xf32>, vector<8x32xf32>, vector<8x32xf32> -> vector<8x256xf32>
    %c0_53 = arith.constant 0 : index
    %c0_54 = arith.constant 0 : index
    %267 = vector.load %arg4[%c0_53, %c0_54] : memref<256x8xf32, #tpu.memory_space<vmem>>, vector<256x8xf32>
    %cst_55 = arith.constant dense<0.000000e+00> : vector<8x8xf32>
    %268 = tpu.matmul %266, %267, %cst_55 {dimension_numbers = #tpu.dot_dimension_numbers<[1], [0], [0], [1], [0, 0, 1, 1], [], []>} : vector<8x256xf32>, vector<256x8xf32>, vector<8x8xf32> -> vector<8x8xf32>
    %c0_56 = arith.constant 0 : index
    %c0_57 = arith.constant 0 : index
    %269 = memref.load %arg6[%c0_56, %c0_57] : memref<1x1xf32, #tpu.memory_space<smem>>
    %270 = vector.broadcast %269 : f32 to vector<8x8xf32>
    %271 = arith.addf %268, %270 : vector<8x8xf32>
    %272 = arith.negf %271 : vector<8x8xf32>
    %273 = math.exp %272 : vector<8x8xf32>
    %cst_58 = arith.constant 1.000000e+00 : f32
    %274 = vector.broadcast %cst_58 : f32 to vector<8x8xf32>
    %275 = arith.addf %274, %273 : vector<8x8xf32>
    %276 = arith.divf %274, %275 : vector<8x8xf32>
    %c0_59 = arith.constant 0 : index
    %c0_60 = arith.constant 0 : index
    %277 = vector.load %arg5[%c0_59, %c0_60] : memref<8x256xf32, #tpu.memory_space<vmem>>, vector<8x256xf32>
    %cst_61 = arith.constant dense<0.000000e+00> : vector<8x256xf32>
    %278 = tpu.matmul %276, %277, %cst_61 {dimension_numbers = #tpu.dot_dimension_numbers<[1], [0], [0], [1], [0, 0, 1, 1], [], []>} : vector<8x8xf32>, vector<8x256xf32>, vector<8x256xf32> -> vector<8x256xf32>
    %279 = arith.mulf %266, %278 : vector<8x256xf32>
    %c0_62 = arith.constant 0 : index
    %c0_63 = arith.constant 0 : index
    %c0_64 = arith.constant 0 : index
    %280 = vector.load %arg8[%c0_62, %c0_63, %c0_64] : memref<1x8x256xf32, #tpu.memory_space<vmem>>, vector<1x8x256xf32>
    %281 = vector.shape_cast %280 : vector<1x8x256xf32> to vector<8x256xf32>
    %282 = vector.shape_cast %279 : vector<8x256xf32> to vector<1x8x256xf32>
    tpu.vector_store %arg8[%c0_62, %c0_63, %c0_64], %282 {strides = array<i32>} : memref<1x8x256xf32, #tpu.memory_space<vmem>>, vector<1x8x256xf32>,
    %c0_i32_65 = arith.constant 0 : i32
    %283 = arith.cmpi eq, %arg1, %c0_i32_65 : i32
    %284 = arith.extui %283 : i1 to i32
    %c0_i32_66 = arith.constant 0 : i32
    %285 = arith.cmpi ne, %284, %c0_i32_66 : i32
    scf.if %285 {
      %c0_67 = arith.constant 0 : index
      %c0_68 = arith.constant 0 : index
      %286 = vector.load %arg9[%c0_67, %c0_68] : memref<8x32xf32, #tpu.memory_space<vmem>>, vector<8x32xf32>
      tpu.vector_store %arg9[%c0_67, %c0_68], %259 {strides = array<i32>} : memref<8x32xf32, #tpu.memory_space<vmem>>, vector<8x32xf32>,
      %c0_69 = arith.constant 0 : index
      %c0_70 = arith.constant 0 : index
      %287 = vector.load %arg10[%c0_69, %c0_70] : memref<8x32xf32, #tpu.memory_space<vmem>>, vector<8x32xf32>
      tpu.vector_store %arg10[%c0_69, %c0_70], %256 {strides = array<i32>} : memref<8x32xf32, #tpu.memory_space<vmem>>, vector<8x32xf32>,
    } else {
    }
    return
  }
  func.func @transform_0(%arg0: i32, %arg1: i32) -> (i32, i32, i32) {
    %c0_i32 = arith.constant 0 : i32
    %c0_i32_0 = arith.constant 0 : i32
    return %arg1, %arg0, %c0_i32 : i32, i32, i32
  }
  func.func @transform_1(%arg0: i32, %arg1: i32) -> (i32, i32) {
    %c0_i32 = arith.constant 0 : i32
    %c0_i32_0 = arith.constant 0 : i32
    %c0_i32_1 = arith.constant 0 : i32
    return %c0_i32, %c0_i32_0 : i32, i32
  }
  func.func @transform_2(%arg0: i32, %arg1: i32) -> (i32, i32) {
    %c0_i32 = arith.constant 0 : i32
    %c0_i32_0 = arith.constant 0 : i32
    %c0_i32_1 = arith.constant 0 : i32
    return %c0_i32, %c0_i32_0 : i32, i32
  }
  func.func @transform_3(%arg0: i32, %arg1: i32) -> (i32, i32) {
    %c0_i32 = arith.constant 0 : i32
    %c0_i32_0 = arith.constant 0 : i32
    %c0_i32_1 = arith.constant 0 : i32
    return %c0_i32, %c0_i32_0 : i32, i32
  }
  func.func @transform_4(%arg0: i32, %arg1: i32) -> (i32, i32) {
    %c0_i32 = arith.constant 0 : i32
    %c0_i32_0 = arith.constant 0 : i32
    %c0_i32_1 = arith.constant 0 : i32
    return %c0_i32, %c0_i32_0 : i32, i32
  }
  func.func @transform_5(%arg0: i32, %arg1: i32) -> (i32, i32) {
    %c0_i32 = arith.constant 0 : i32
    %c0_i32_0 = arith.constant 0 : i32
    return %arg0, %c0_i32 : i32, i32
  }
  func.func @transform_6(%arg0: i32, %arg1: i32) -> (i32, i32, i32) {
    %c0_i32 = arith.constant 0 : i32
    %c0_i32_0 = arith.constant 0 : i32
    return %arg1, %arg0, %c0_i32 : i32, i32, i32
  }
  func.func @transform_7(%arg0: i32, %arg1: i32) -> (i32, i32) {
    %c0_i32 = arith.constant 0 : i32
    %c0_i32_0 = arith.constant 0 : i32
    return %arg0, %c0_i32 : i32, i32
  }
  func.func @transform_8(%arg0: i32, %arg1: i32) -> (i32, i32) {
    %c0_i32 = arith.constant 0 : i32
    %c0_i32_0 = arith.constant 0 : i32
    return %arg0, %c0_i32 : i32, i32
  }
}

</mosaic_0001>

<bundles_post_ra>
// kernel: gated_rnn_encoder_forward.1
= control target key start
LH: loop header
LB: loop body
LE: loop exit
PB: predicated region body
PF: predicated region fallthrough
CT: control target
= control target key end

     0   :  { %15 = vsyncpa [#allocation6], 0  ;;  %vm33_vm0 = vcmask 261120   ;;  %v1038_v2 = vmov 0.0   ;;  %s1464_s0 = inlined_call_operand.vmem [shape: f32[8,8,128], index: 0, kind: input, shape index: {}]   ;;  %s1465_s1 = inlined_call_operand.vmem [shape: f32[32,128], index: 1, kind: input, shape index: {}]   ;;  %s1466_s2 = inlined_call_operand.vmem [shape: f32[256,8], index: 2, kind: input, shape index: {}]   ;;  %s1467_s3 = inlined_call_operand.vmem [shape: f32[8,256], index: 3, kind: input, shape index: {}]   ;;  %s1468_s4 = inlined_call_operand.<no memory space> [shape: f32[1,1], index: 4, kind: input, shape index: {}]   ;;  %s1469_s5 = inlined_call_operand.vmem [shape: s32[8,1], index: 5, kind: input, shape index: {}]   ;;  %s1470_s6 = inlined_call_operand.vmem [shape: f32[1,8,256], index: 6, kind: output, shape index: {0}]   ;;  %s1471_s7 = inlined_call_operand.hbm [shape: f32[8,32], index: 7, kind: output, shape index: {1}]   ;;  %s1472_s8 = inlined_call_operand.hbm [shape: f32[8,32], index: 8, kind: output, shape index: {2}]  }
   0x1   :  { %v1093_v0 = vld [vmem:[%s1465_s1 + $0x18] sm:$0xff]  ;;  %v1098_v1 = vld [vmem:[%s1465_s1 + $0x10] sm:$0xff]  ;;  %34 = vst.msk [vmem:[#allocation2] sm:$0xff] %vm33_vm0, %v1038_v2 }
   0x2   :  { %84 = vmatpush.msra.mxu2 %v1093_v0  ;;  %164 = vmatpush.msra.mxu3 %v1093_v0 }
   0x3   :  { %16 = vsyncpa [#allocation8], 0  ;;  %v1106_v3 = vld [vmem:[%s1465_s1 + $0x8] sm:$0xff]  ;;  %35 = vst.msk [vmem:[#allocation3] sm:$0xff] %vm33_vm0, %v1038_v2  ;;  %383 = vmatpush.msra.mxu0 %v1093_v0  ;;  %456 = vmatpush.msra.mxu1 %v1093_v0  ;;  %v1116_v4 = vld [vmem:[%s1465_s1] sm:$0xff]  ;;  %s1039_s14 = smov 64  }
   0x4   :  { %85 = vmatpush.msra.mxu2 %v1098_v1  ;;  %165 = vmatpush.msra.mxu3 %v1098_v1  ;;  %v67_v6 = vld [vmem:[%s1464_s0] sm:$0xff]  ;;  %s1040_s15 = smov 32   ;;  %v1041_v16 = vmov 0   ;;  %v884_v40 = vld [vmem:[%s1464_s0 + $0x8] sm:$0xff]  ;;  %s855_s12 = sshll.u32 %s1471_s7, 4  ;;  %s856_s12 = int_to_ptr.hbm [resolvable:$true] %s855_s12 }
   0x5   :  { %384 = vmatpush.msra.mxu0 %v1098_v1  ;;  %457 = vmatpush.msra.mxu1 %v1098_v1  ;;  %v1149_v14 = vld [vmem:[%s1469_s5] sm:$0xff]  ;;  %s1042_s5 = smov 96   ;;  %s1044_s1 = smov [#allocation7]  }
   0x6   :  { %86 = vmatpush.msra.mxu2 %v1106_v3  ;;  %166 = vmatpush.msra.mxu3 %v1106_v3  ;;  %vm45_vm1 = vcmp.gt.s32.totalorder %v1149_v14, 0  ;;  %vm48_vm7 = vcmp.gt.s32.totalorder %v1149_v14, 1  ;;  %vm51_vm13 = vcmp.gt.s32.totalorder %v1149_v14, 2  ;;  %vm54_vm14 = vcmp.gt.s32.totalorder %v1149_v14, 3  ;;  %s864_s13 = sshll.u32 %s1044_s1, 4  ;;  %s865_s13 = int_to_ptr.vmem [resolvable:$true] %s864_s13 }
   0x7   :  { %385 = vmatpush.msra.mxu0 %v1106_v3  ;;  %458 = vmatpush.msra.mxu1 %v1106_v3  ;;  %v134_v17 = vsel %vm45_vm1, 1, %v1041_v16  ;;  %v210_v44 = vsel %vm48_vm7, 1, %v1041_v16 }
   0x8   :  { %87 = vmatpush.msra.mxu2 %v1116_v4  ;;  %167 = vmatpush.msra.mxu3 %v1116_v4  ;;  %v36_v5 = vld [vmem:[#allocation2] sm:$0xff] }
   0x9   :  { %882 = vmatmul.msk.f32.vlgmr.msra.gmra.mxu2 %vm33_vm0, %v36_v5  ;;  %386 = vmatpush.msra.mxu0 %v1116_v4 }
   0xa   :  { %237 = vmatpush.msrb.mxu2 %v1093_v0  ;;  %310 = vmatpush.msrb.mxu3 %v1093_v0  ;;  %v37_v10 = vld [vmem:[#allocation3] sm:$0xff] }
   0xb   :  { %459 = vmatpush.msra.mxu1 %v1116_v4  ;;  %915 = vset.pattern.permute.xlu2 %v1041_v16 }
   0xc   :  { %238 = vmatpush.msrb.mxu2 %v1098_v1  ;;  %311 = vmatpush.msrb.mxu3 %v1098_v1 }
   0xd   :  { %916 = vset.pattern.permute.xlu1 %v1041_v16  ;;  %917 = vset.pattern.permute.xlu0 %v1041_v16 }
   0xe   :  { %239 = vmatpush.msrb.mxu2 %v1106_v3  ;;  %312 = vmatpush.msrb.mxu3 %v1106_v3 }
   0xf   :  { %136 = vperm.xlu2 %915, %v134_v17  }
  0x10   :  { %240 = vmatpush.msrb.mxu2 %v1116_v4  ;;  %313 = vmatpush.msrb.mxu3 %v1116_v4 }
  0x12   :  { %529 = vmatpush.msra.mxu2 %v1093_v0 }
  0x14   :  { %530 = vmatpush.msra.mxu2 %v1098_v1 }
  0x16   :  { %531 = vmatpush.msra.mxu2 %v1106_v3 }
  0x17   :  { %140 = vrot.lane.b32.xlu2 %v36_v5, %s1042_s5 }
  0x18   :  { %532 = vmatpush.msra.mxu2 %v1116_v4 }
  0x69   :  { %v1159_v34 = vpop.permute.xlu2 %136 }
  0x6a   :  { %vm138_vm6 = vcmp.eq.s32.totalorder %v1159_v34, 1  ;;  %v902_v34 = vld [vmem:[%s1464_s0 + $0x38] sm:$0xff] }
  0x71   :  { %v141_v36 = vpop.permute.xlu2 %140 }
  0x8c   :  { %v89_v7 = vpop.f32.mrf.mxu2 }
  0x8d   :  { %v92_v8 = vadd.f32 %v89_v7, %v67_v6  ;;  %v887_v6 = vld [vmem:[%s1464_s0 + $0x10] sm:$0xff] }
  0x8f   :  { %918 = vtanh.f32 %v92_v8  ;;  %v883_v11 = vmul.f32 -1.442695, %v92_v8 }
  0x91   :  { %920 = vpow2.f32 %v883_v11 }
  0x95   :  { %v919_v9 = vpop.eup %918 }
  0x96   :  { %119 = vrot.lane.b32.xlu0 %v919_v9, %s1039_s14 }
  0x97   :  { %v921_v12 = vpop.eup %920 }
  0x98   :  { %v96_v13 = vadd.f32 1.0, %v921_v12 }
  0x9a   :  { %922 = vrcp.f32 %v96_v13  ;;  %v108_v22 = vand.u32 2147483648, %v96_v13  ;;  %vm102_vm3 = vweird.f32 %v96_v13  ;;  %v106_v23 = vand.u32 2147483647, %v96_v13 }
  0x9c   :  { %v109_v25 = vor.u32 1.1754944e-38, %v108_v22  ;;  %vm107_vm5 = vcmp.eq.f32.partialorder %v106_v23, 8.507059e+37 }
  0x9e   :  { %114 = vrot.lane.b32.xlu0 %v37_v10, %s1040_s15 }
  0xa0   :  { %v923_v15 = vpop.eup %922 }
  0xa1   :  { %v98_v18 = vmul.f32 %v923_v15, %v96_v13  ;;  %vm103_vm2 = vweird.f32 %v923_v15  ;;  %v283_v13 = vsel %vm51_vm13, 1, %v1041_v16 }
  0xa2   :  { %vm104_vm4 = vmor %vm102_vm3, %vm103_vm2 }
  0xa3   :  { %v99_v19 = vsub.f32 1.0, %v98_v18 }
  0xa5   :  { %v100_v20 = vmul.f32 %v923_v15, %v99_v19 }
  0xa7   :  { %v101_v21 = vadd.f32 %v923_v15, %v100_v20 }
  0xa9   :  { %v105_v24 = vsel %vm104_vm4, %v923_v15, %v101_v21  ;;  %v356_v15 = vsel %vm54_vm14, 1, %v1041_v16 }
  0xaa   :  { %v110_v27 = vsel %vm107_vm5, %v109_v25, %v105_v24 }
 0x108   :  { %v120_v26 = vpop.permute.xlu0 %119 }
 0x109   :  { %v122_v28 = vmul.f32 %v120_v26, %v110_v27 }
 0x10b   :  { %124 = vrot.lane.b32.xlu1 %v122_v28, %s1040_s15 }
 0x110   :  { %v115_v29 = vpop.permute.xlu0 %114 }
 0x111   :  { %v117_v30 = vmul.f32 %v115_v29, %v110_v27 }
 0x17d   :  { %v125_v31 = vpop.permute.xlu1 %124 }
 0x17e   :  { %v127_v32 = vadd.f32 %v125_v31, %v117_v30 }
 0x180   :  { %924 = vtanh.f32 %v127_v32  ;;  %v139_v60 = vsel %vm138_vm6, %v127_v32, %v115_v29 }
 0x186   :  { %v925_v33 = vpop.eup %924 }
 0x187   :  { %130 = vrot.lane.b32.xlu1 %v925_v33, %s1039_s14 }
 0x1f9   :  { %v131_v35 = vpop.permute.xlu1 %130 }
 0x1fa   :  { %v1161_v37 = vmul.f32 %v131_v35, %v110_v27 }
 0x1fc   :  { %v143_v38 = vsel %vm138_vm6, %v1161_v37, %v141_v36 }
 0x1fd   :  { %148 = vrot.lane.b32.xlu0 %v143_v38, %s1040_s15 }
 0x26f   :  { %v149_v39 = vpop.permute.xlu0 %148 }
 0x270   :  { %885 = vmatmul.msk.f32.vlgmr.msra.gmra.mxu3 %vm33_vm0, %v149_v39 }
 0x271   :  { %602 = vmatpush.msra.mxu3 %v1093_v0 }
 0x273   :  { %603 = vmatpush.msra.mxu3 %v1098_v1 }
 0x275   :  { %604 = vmatpush.msra.mxu3 %v1106_v3 }
 0x277   :  { %605 = vmatpush.msra.mxu3 %v1116_v4 }
 0x2f3   :  { %v169_v41 = vpop.f32.mrf.mxu3 }
 0x2f4   :  { %v172_v42 = vadd.f32 %v884_v40, %v169_v41  ;;  %v890_v41 = vld [vmem:[%s1464_s0 + $0x18] sm:$0xff] }
 0x2f6   :  { %926 = vtanh.f32 %v172_v42  ;;  %v886_v45 = vmul.f32 -1.442695, %v172_v42 }
 0x2f8   :  { %928 = vpow2.f32 %v886_v45 }
 0x2fc   :  { %v927_v43 = vpop.eup %926 }
 0x2fd   :  { %195 = vrot.lane.b32.xlu1 %v927_v43, %s1039_s14 }
 0x2fe   :  { %v929_v46 = vpop.eup %928 }
 0x2ff   :  { %v176_v47 = vadd.f32 1.0, %v929_v46 }
 0x301   :  { %930 = vrcp.f32 %v176_v47  ;;  %v188_v53 = vand.u32 2147483648, %v176_v47  ;;  %vm182_vm9 = vweird.f32 %v176_v47  ;;  %v186_v54 = vand.u32 2147483647, %v176_v47 }
 0x303   :  { %v189_v56 = vor.u32 1.1754944e-38, %v188_v53  ;;  %vm187_vm11 = vcmp.eq.f32.partialorder %v186_v54, 8.507059e+37 }
 0x305   :  { %212 = vperm.xlu1 %916, %v210_v44  }
 0x307   :  { %v931_v48 = vpop.eup %930 }
 0x308   :  { %v178_v49 = vmul.f32 %v931_v48, %v176_v47  ;;  %vm183_vm8 = vweird.f32 %v931_v48 }
 0x309   :  { %vm184_vm10 = vmor %vm182_vm9, %vm183_vm8 }
 0x30a   :  { %v179_v50 = vsub.f32 1.0, %v178_v49 }
 0x30c   :  { %v180_v51 = vmul.f32 %v931_v48, %v179_v50 }
 0x30e   :  { %v181_v52 = vadd.f32 %v931_v48, %v180_v51 }
 0x310   :  { %v185_v55 = vsel %vm184_vm10, %v931_v48, %v181_v52 }
 0x311   :  { %v190_v58 = vsel %vm187_vm11, %v189_v56, %v185_v55  ;;  %vm57_vm11 = vcmp.gt.s32.totalorder %v1149_v14, 4 }
 0x312   :  { %v193_v61 = vmul.f32 %v190_v58, %v139_v60 }
 0x36f   :  { %v196_v57 = vpop.permute.xlu1 %195 }
 0x370   :  { %v198_v59 = vmul.f32 %v196_v57, %v190_v58 }
 0x372   :  { %200 = vrot.lane.b32.xlu2 %v198_v59, %s1040_s15 }
 0x377   :  { %v1183_v1 = vpop.permute.xlu1 %212 }
 0x378   :  { %vm214_vm12 = vcmp.eq.s32.totalorder %v1183_v1, 1 }
 0x3cc   :  { %v201_v62 = vpop.permute.xlu2 %200 }
 0x3cd   :  { %v203_v63 = vadd.f32 %v201_v62, %v193_v61 }
 0x3cf   :  { %932 = vtanh.f32 %v203_v63  ;;  %v215_v29 = vsel %vm214_vm12, %v203_v63, %v139_v60 }
 0x3d5   :  { %v933_v0 = vpop.eup %932 }
 0x3d6   :  { %206 = vrot.lane.b32.xlu0 %v933_v0, %s1039_s14 }
 0x448   :  { %v207_v2 = vpop.permute.xlu0 %206 }
 0x449   :  { %v1185_v3 = vmul.f32 %v207_v2, %v190_v58 }
 0x44b   :  { %v216_v4 = vsel %vm214_vm12, %v1185_v3, %v143_v38 }
 0x44c   :  { %221 = vrot.lane.b32.xlu2 %v216_v4, %s1040_s15 }
 0x4a6   :  { %v222_v5 = vpop.permute.xlu2 %221 }
 0x4a7   :  { %888 = vmatmul.msk.f32.vlgmr.msrb.gmra.mxu2 %vm33_vm0, %v222_v5 }
 0x52a   :  { %v242_v7 = vpop.f32.mrf.mxu2 }
 0x52b   :  { %v245_v8 = vadd.f32 %v887_v6, %v242_v7 }
 0x52d   :  { %934 = vtanh.f32 %v245_v8  ;;  %v889_v10 = vmul.f32 -1.442695, %v245_v8  ;;  %v893_v8 = vld [vmem:[%s1464_s0 + $0x20] sm:$0xff] }
 0x52f   :  { %936 = vpow2.f32 %v889_v10 }
 0x533   :  { %v935_v9 = vpop.eup %934 }
 0x534   :  { %268 = vrot.lane.b32.xlu0 %v935_v9, %s1039_s14 }
 0x535   :  { %v937_v11 = vpop.eup %936 }
 0x536   :  { %v249_v12 = vadd.f32 1.0, %v937_v11 }
 0x538   :  { %938 = vrcp.f32 %v249_v12  ;;  %v261_v22 = vand.u32 2147483648, %v249_v12  ;;  %vm255_vm1 = vweird.f32 %v249_v12  ;;  %v259_v23 = vand.u32 2147483647, %v249_v12 }
 0x53a   :  { %v262_v25 = vor.u32 1.1754944e-38, %v261_v22  ;;  %vm260_vm3 = vcmp.eq.f32.partialorder %v259_v23, 8.507059e+37 }
 0x53c   :  { %285 = vperm.xlu0 %917, %v283_v13  }
 0x53e   :  { %v939_v17 = vpop.eup %938 }
 0x53f   :  { %v251_v18 = vmul.f32 %v939_v17, %v249_v12  ;;  %vm256_vm15 = vweird.f32 %v939_v17  ;;  %v429_v12 = vsel %vm57_vm11, 1, %v1041_v16 }
 0x540   :  { %vm257_vm2 = vmor %vm255_vm1, %vm256_vm15 }
 0x541   :  { %v252_v19 = vsub.f32 1.0, %v251_v18 }
 0x543   :  { %v253_v20 = vmul.f32 %v939_v17, %v252_v19 }
 0x544   :  { %358 = vperm.xlu0 %917, %v356_v15  }
 0x545   :  { %v254_v21 = vadd.f32 %v939_v17, %v253_v20 }
 0x547   :  { %v258_v24 = vsel %vm257_vm2, %v939_v17, %v254_v21 }
 0x548   :  { %v263_v27 = vsel %vm260_vm3, %v262_v25, %v258_v24  ;;  %vm60_vm3 = vcmp.gt.s32.totalorder %v1149_v14, 5 }
 0x549   :  { %v266_v30 = vmul.f32 %v263_v27, %v215_v29 }
 0x5a6   :  { %v269_v26 = vpop.permute.xlu0 %268 }
 0x5a7   :  { %v271_v28 = vmul.f32 %v269_v26, %v263_v27 }
 0x5a9   :  { %273 = vrot.lane.b32.xlu1 %v271_v28, %s1040_s15 }
 0x5ae   :  { %v1205_v35 = vpop.permute.xlu0 %285 }
 0x5af   :  { %vm287_vm4 = vcmp.eq.s32.totalorder %v1205_v35, 1  ;;  %v713_v35 = vld [vmem:[%s1466_s2 + $0x78] sm:$0xff] }
 0x5b0   :  { %732 = vmatpush.msrb.mxu0 %v713_v35  ;;  %v716_v35 = vld [vmem:[%s1466_s2 + $0x90] sm:$0xff] }
 0x5b6   :  { %v1223_v2 = vpop.permute.xlu0 %358 }
 0x5b7   :  { %vm360_vm10 = vcmp.eq.s32.totalorder %v1223_v2, 1  ;;  %v727_v2 = vld [vmem:[%s1466_s2 + $0xe8] sm:$0xff] }
 0x61b   :  { %v274_v31 = vpop.permute.xlu1 %273 }
 0x61c   :  { %v276_v32 = vadd.f32 %v274_v31, %v266_v30 }
 0x61e   :  { %940 = vtanh.f32 %v276_v32  ;;  %v288_v60 = vsel %vm287_vm4, %v276_v32, %v215_v29 }
 0x624   :  { %v941_v33 = vpop.eup %940 }
 0x625   :  { %279 = vrot.lane.b32.xlu2 %v941_v33, %s1039_s14 }
 0x67f   :  { %v280_v36 = vpop.permute.xlu2 %279 }
 0x680   :  { %v1207_v38 = vmul.f32 %v280_v36, %v263_v27 }
 0x682   :  { %v289_v39 = vsel %vm287_vm4, %v1207_v38, %v216_v4 }
 0x683   :  { %294 = vrot.lane.b32.xlu1 %v289_v39, %s1040_s15 }
 0x6f5   :  { %v295_v40 = vpop.permute.xlu1 %294 }
 0x6f6   :  { %891 = vmatmul.msk.f32.vlgmr.msrb.gmra.mxu3 %vm33_vm0, %v295_v40 }
 0x779   :  { %v315_v42 = vpop.f32.mrf.mxu3 }
 0x77a   :  { %v318_v43 = vadd.f32 %v890_v41, %v315_v42 }
 0x77c   :  { %942 = vtanh.f32 %v318_v43  ;;  %v892_v45 = vmul.f32 -1.442695, %v318_v43 }
 0x77e   :  { %944 = vpow2.f32 %v892_v45 }
 0x782   :  { %v943_v44 = vpop.eup %942 }
 0x783   :  { %341 = vrot.lane.b32.xlu2 %v943_v44, %s1039_s14  ;;  %v896_v44 = vld [vmem:[%s1464_s0 + $0x28] sm:$0xff] }
 0x784   :  { %v945_v46 = vpop.eup %944 }
 0x785   :  { %v322_v47 = vadd.f32 1.0, %v945_v46 }
 0x787   :  { %946 = vrcp.f32 %v322_v47  ;;  %v334_v53 = vand.u32 2147483648, %v322_v47  ;;  %vm328_vm7 = vweird.f32 %v322_v47  ;;  %v332_v54 = vand.u32 2147483647, %v322_v47 }
 0x789   :  { %v335_v56 = vor.u32 1.1754944e-38, %v334_v53  ;;  %vm333_vm9 = vcmp.eq.f32.partialorder %v332_v54, 8.507059e+37 }
 0x78d   :  { %v947_v48 = vpop.eup %946 }
 0x78e   :  { %v324_v49 = vmul.f32 %v947_v48, %v322_v47  ;;  %vm329_vm5 = vweird.f32 %v947_v48 }
 0x78f   :  { %vm330_vm8 = vmor %vm328_vm7, %vm329_vm5 }
 0x790   :  { %v325_v50 = vsub.f32 1.0, %v324_v49 }
 0x792   :  { %v326_v51 = vmul.f32 %v947_v48, %v325_v50 }
 0x794   :  { %v327_v52 = vadd.f32 %v947_v48, %v326_v51 }
 0x796   :  { %v331_v55 = vsel %vm330_vm8, %v947_v48, %v327_v52  ;;  %v502_v48 = vsel %vm60_vm3, 1, %v1041_v16 }
 0x797   :  { %v336_v58 = vsel %vm333_vm9, %v335_v56, %v331_v55 }
 0x798   :  { %v339_v61 = vmul.f32 %v336_v58, %v288_v60 }
 0x7dd   :  { %v342_v57 = vpop.permute.xlu2 %341 }
 0x7de   :  { %v344_v59 = vmul.f32 %v342_v57, %v336_v58 }
 0x7e0   :  { %346 = vrot.lane.b32.xlu1 %v344_v59, %s1040_s15 }
 0x852   :  { %v347_v62 = vpop.permute.xlu1 %346 }
 0x853   :  { %v349_v63 = vadd.f32 %v347_v62, %v339_v61 }
 0x855   :  { %948 = vtanh.f32 %v349_v63  ;;  %v361_v30 = vsel %vm360_vm10, %v349_v63, %v288_v60 }
 0x85b   :  { %v949_v0 = vpop.eup %948 }
 0x85c   :  { %352 = vrot.lane.b32.xlu2 %v949_v0, %s1039_s14 }
 0x8b6   :  { %v353_v4 = vpop.permute.xlu2 %352 }
 0x8b7   :  { %v1225_v5 = vmul.f32 %v353_v4, %v336_v58 }
 0x8b9   :  { %v362_v6 = vsel %vm360_vm10, %v1225_v5, %v289_v39 }
 0x8ba   :  { %367 = vrot.lane.b32.xlu1 %v362_v6, %s1040_s15 }
 0x92c   :  { %v368_v7 = vpop.permute.xlu1 %367 }
 0x92d   :  { %894 = vmatmul.msk.f32.vlgmr.msra.gmra.mxu0 %vm33_vm0, %v368_v7 }
 0x9aa   :  { %v388_v9 = vpop.f32.mrf.mxu0 }
 0x9ab   :  { %v391_v10 = vadd.f32 %v893_v8, %v388_v9 }
 0x9ad   :  { %950 = vtanh.f32 %v391_v10  ;;  %v895_v13 = vmul.f32 -1.442695, %v391_v10 }
 0x9af   :  { %952 = vpow2.f32 %v895_v13 }
 0x9b3   :  { %v951_v11 = vpop.eup %950 }
 0x9b4   :  { %414 = vrot.lane.b32.xlu2 %v951_v11, %s1039_s14 }
 0x9b5   :  { %v953_v15 = vpop.eup %952 }
 0x9b6   :  { %v395_v17 = vadd.f32 1.0, %v953_v15  ;;  %v899_v15 = vld [vmem:[%s1464_s0 + $0x30] sm:$0xff] }
 0x9b8   :  { %954 = vrcp.f32 %v395_v17  ;;  %v407_v23 = vand.u32 2147483648, %v395_v17  ;;  %vm401_vm14 = vweird.f32 %v395_v17  ;;  %v405_v24 = vand.u32 2147483647, %v395_v17 }
 0x9ba   :  { %v408_v26 = vor.u32 1.1754944e-38, %v407_v23  ;;  %vm406_vm1 = vcmp.eq.f32.partialorder %v405_v24, 8.507059e+37 }
 0x9bc   :  { %431 = vperm.xlu2 %915, %v429_v12  }
 0x9be   :  { %v955_v18 = vpop.eup %954 }
 0x9bf   :  { %v397_v19 = vmul.f32 %v955_v18, %v395_v17  ;;  %vm402_vm13 = vweird.f32 %v955_v18 }
 0x9c0   :  { %vm403_vm15 = vmor %vm401_vm14, %vm402_vm13  ;;  %vm63_vm13 = vcmp.gt.s32.totalorder %v1149_v14, 6 }
 0x9c1   :  { %v398_v20 = vsub.f32 1.0, %v397_v19 }
 0x9c3   :  { %v399_v21 = vmul.f32 %v955_v18, %v398_v20  ;;  %v575_v20 = vsel %vm63_vm13, 1, %v1041_v16 }
 0x9c5   :  { %v400_v22 = vadd.f32 %v955_v18, %v399_v21 }
 0x9c7   :  { %v404_v25 = vsel %vm403_vm15, %v955_v18, %v400_v22 }
 0x9c8   :  { %v409_v28 = vsel %vm406_vm1, %v408_v26, %v404_v25 }
 0x9c9   :  { %v412_v31 = vmul.f32 %v409_v28, %v361_v30 }
 0xa0e   :  { %v415_v27 = vpop.permute.xlu2 %414 }
 0xa0f   :  { %v417_v29 = vmul.f32 %v415_v27, %v409_v28 }
 0xa11   :  { %419 = vrot.lane.b32.xlu0 %v417_v29, %s1040_s15 }
 0xa16   :  { %v1243_v39 = vpop.permute.xlu2 %431 }
 0xa17   :  { %vm433_vm2 = vcmp.eq.s32.totalorder %v1243_v39, 1  ;;  %v719_v39 = vld [vmem:[%s1466_s2 + $0xa8] sm:$0xff] }
 0xa83   :  { %v420_v32 = vpop.permute.xlu0 %419 }
 0xa84   :  { %v422_v33 = vadd.f32 %v420_v32, %v412_v31 }
 0xa86   :  { %956 = vtanh.f32 %v422_v33  ;;  %v434_v0 = vsel %vm433_vm2, %v422_v33, %v361_v30 }
 0xa8c   :  { %v957_v36 = vpop.eup %956 }
 0xa8d   :  { %425 = vrot.lane.b32.xlu1 %v957_v36, %s1039_s14 }
 0xaff   :  { %v426_v40 = vpop.permute.xlu1 %425 }
 0xb00   :  { %v1245_v41 = vmul.f32 %v426_v40, %v409_v28 }
 0xb02   :  { %v435_v42 = vsel %vm433_vm2, %v1245_v41, %v362_v6 }
 0xb03   :  { %440 = vrot.lane.b32.xlu0 %v435_v42, %s1040_s15 }
 0xb75   :  { %v441_v43 = vpop.permute.xlu0 %440 }
 0xb76   :  { %897 = vmatmul.msk.f32.vlgmr.msra.gmra.mxu1 %vm33_vm0, %v441_v43 }
 0xbf3   :  { %v461_v45 = vpop.f32.mrf.mxu1 }
 0xbf4   :  { %v464_v46 = vadd.f32 %v896_v44, %v461_v45 }
 0xbf6   :  { %958 = vtanh.f32 %v464_v46  ;;  %v898_v49 = vmul.f32 -1.442695, %v464_v46 }
 0xbf8   :  { %960 = vpow2.f32 %v898_v49 }
 0xbfc   :  { %v959_v47 = vpop.eup %958 }
 0xbfd   :  { %487 = vrot.lane.b32.xlu1 %v959_v47, %s1039_s14 }
 0xbfe   :  { %v961_v50 = vpop.eup %960 }
 0xbff   :  { %v468_v51 = vadd.f32 1.0, %v961_v50 }
 0xc01   :  { %962 = vrcp.f32 %v468_v51  ;;  %v480_v57 = vand.u32 2147483648, %v468_v51  ;;  %vm474_vm7 = vweird.f32 %v468_v51  ;;  %v478_v58 = vand.u32 2147483647, %v468_v51 }
 0xc03   :  { %v481_v60 = vor.u32 1.1754944e-38, %v480_v57  ;;  %vm479_vm9 = vcmp.eq.f32.partialorder %v478_v58, 8.507059e+37  ;;  %v710_v57 = vld [vmem:[%s1466_s2 + $0x60] sm:$0xff]  ;;  %v709_v58 = vld [vmem:[%s1466_s2 + $0x58] sm:$0xff] }
 0xc05   :  { %504 = vperm.xlu1 %916, %v502_v48  }
 0xc07   :  { %v963_v52 = vpop.eup %962 }
 0xc08   :  { %v470_v53 = vmul.f32 %v963_v52, %v468_v51  ;;  %vm475_vm5 = vweird.f32 %v963_v52  ;;  %v144_v51 = vsel %vm138_vm6, %v1161_v37, 0.0  ;;  %vm66_vm6 = vcmp.gt.s32.totalorder %v1149_v14, 7  ;;  %v702_v14 = vld [vmem:[%s1466_s2 + $0x20] sm:$0xff] }
 0xc09   :  { %vm476_vm8 = vmor %vm474_vm7, %vm475_vm5 }
 0xc0a   :  { %v471_v54 = vsub.f32 1.0, %v470_v53 }
 0xc0c   :  { %v472_v55 = vmul.f32 %v963_v52, %v471_v54 }
 0xc0e   :  { %v473_v56 = vadd.f32 %v963_v52, %v472_v55 }
 0xc10   :  { %v477_v59 = vsel %vm476_vm8, %v963_v52, %v473_v56  ;;  %v290_v52 = vsel %vm287_vm4, %v1207_v38, 0.0  ;;  %v712_v38 = vld [vmem:[%s1466_s2 + $0x70] sm:$0xff]  ;;  %v711_v56 = vld [vmem:[%s1466_s2 + $0x68] sm:$0xff] }
 0xc11   :  { %v482_v62 = vsel %vm479_vm9, %v481_v60, %v477_v59  ;;  %733 = vmatpush.msrb.mxu0 %v712_v38  ;;  %v708_v60 = vld [vmem:[%s1466_s2 + $0x50] sm:$0xff]  ;;  %vm691_vm9 = vcmask 523264   ;;  %v715_v38 = vld [vmem:[%s1466_s2 + $0x88] sm:$0xff] }
 0xc12   :  { %v485_v4 = vmul.f32 %v482_v62, %v434_v0 }
 0xc13   :  { %734 = vmatpush.msrb.mxu0 %v711_v56  ;;  %v714_v56 = vld [vmem:[%s1466_s2 + $0x80] sm:$0xff] }
 0xc15   :  { %735 = vmatpush.msrb.mxu0 %v710_v57 }
 0xc17   :  { %736 = vmatpush.msrb.mxu0 %v709_v58 }
 0xc19   :  { %737 = vmatpush.msrb.mxu0 %v708_v60 }
 0xc6f   :  { %v488_v61 = vpop.permute.xlu1 %487 }
 0xc70   :  { %v490_v63 = vmul.f32 %v488_v61, %v482_v62  ;;  %v707_v61 = vld [vmem:[%s1466_s2 + $0x48] sm:$0xff] }
 0xc71   :  { %738 = vmatpush.msrb.mxu0 %v707_v61 }
 0xc72   :  { %492 = vrot.lane.b32.xlu2 %v490_v63, %s1040_s15  ;;  %v705_v63 = vld [vmem:[%s1466_s2 + $0x38] sm:$0xff] }
 0xc77   :  { %v505_v9 = vpop.permute.xlu1 %504 }
 0xc78   :  { %vm506_vm11 = vcmp.eq.s32.totalorder %v505_v9, 1  ;;  %v703_v9 = vld [vmem:[%s1466_s2 + $0x28] sm:$0xff] }
 0xccc   :  { %v493_v6 = vpop.permute.xlu2 %492 }
 0xccd   :  { %v495_v7 = vadd.f32 %v493_v6, %v485_v4  ;;  %v704_v4 = vld [vmem:[%s1466_s2 + $0x30] sm:$0xff]  ;;  %v648_v6 = vsel %vm66_vm6, 1, %v1041_v16  ;;  %v701_v16 = vld [vmem:[%s1466_s2 + $0x18] sm:$0xff] }
 0xccf   :  { %964 = vtanh.f32 %v495_v7 }
 0xcd5   :  { %v965_v8 = vpop.eup %964 }
 0xcd6   :  { %498 = vrot.lane.b32.xlu0 %v965_v8, %s1039_s14 }
 0xd48   :  { %v499_v10 = vpop.permute.xlu0 %498 }
 0xd49   :  { %v501_v11 = vmul.f32 %v499_v10, %v482_v62  ;;  %v706_v62 = vld [vmem:[%s1466_s2 + $0x40] sm:$0xff]  ;;  %v700_v10 = vld [vmem:[%s1466_s2 + $0x10] sm:$0xff] }
 0xd4a   :  { %739 = vmatpush.msrb.mxu0 %v706_v62 }
 0xd4b   :  { %v508_v12 = vsel %vm506_vm11, %v501_v11, %v435_v42  ;;  %v1274_v42 = vsel %vm506_vm11, %v495_v7, %v434_v0  ;;  %v509_v53 = vsel %vm506_vm11, %v501_v11, 0.0  ;;  %v217_v0 = vsel %vm214_vm12, %v1185_v3, 0.0  ;;  %v699_v11 = vld [vmem:[%s1466_s2 + $0x8] sm:$0xff] }
 0xd4c   :  { %513 = vrot.lane.b32.xlu2 %v508_v12, %s1040_s15  ;;  %740 = vmatpush.msrb.mxu0 %v705_v63  ;;  %vm693_vm11 = vcmask 785408  }
 0xd4e   :  { %741 = vmatpush.msrb.mxu0 %v704_v4 }
 0xd50   :  { %742 = vmatpush.msrb.mxu0 %v703_v9 }
 0xd52   :  { %743 = vmatpush.msrb.mxu0 %v702_v14 }
 0xd54   :  { %744 = vmatpush.msrb.mxu0 %v701_v16 }
 0xd56   :  { %745 = vmatpush.msrb.mxu0 %v700_v10 }
 0xd58   :  { %746 = vmatpush.msrb.mxu0 %v699_v11 }
 0xda6   :  { %v514_v13 = vpop.permute.xlu2 %513 }
 0xda7   :  { %900 = vmatmul.msk.f32.vlgmr.msra.gmra.mxu2 %vm33_vm0, %v514_v13 }
 0xe2a   :  { %v534_v17 = vpop.f32.mrf.mxu2 }
 0xe2b   :  { %v537_v18 = vadd.f32 %v899_v15, %v534_v17 }
 0xe2d   :  { %966 = vtanh.f32 %v537_v18  ;;  %v901_v21 = vmul.f32 -1.442695, %v537_v18 }
 0xe2f   :  { %968 = vpow2.f32 %v901_v21 }
 0xe33   :  { %v967_v19 = vpop.eup %966 }
 0xe34   :  { %560 = vrot.lane.b32.xlu0 %v967_v19, %s1039_s14 }
 0xe35   :  { %v969_v22 = vpop.eup %968 }
 0xe36   :  { %v541_v23 = vadd.f32 1.0, %v969_v22 }
 0xe38   :  { %970 = vrcp.f32 %v541_v23  ;;  %v553_v29 = vand.u32 2147483648, %v541_v23  ;;  %vm547_vm15 = vweird.f32 %v541_v23  ;;  %v551_v30 = vand.u32 2147483647, %v541_v23 }
 0xe3a   :  { %v554_v32 = vor.u32 1.1754944e-38, %v553_v29  ;;  %vm552_vm3 = vcmp.eq.f32.partialorder %v551_v30, 8.507059e+37 }
 0xe3c   :  { %577 = vperm.xlu0 %917, %v575_v20  }
 0xe3e   :  { %v971_v24 = vpop.eup %970 }
 0xe3f   :  { %v543_v25 = vmul.f32 %v971_v24, %v541_v23  ;;  %vm548_vm14 = vweird.f32 %v971_v24 }
 0xe40   :  { %vm549_vm1 = vmor %vm547_vm15, %vm548_vm14  ;;  %vm793_vm14 = vcmask 64512  }
 0xe41   :  { %v544_v26 = vsub.f32 1.0, %v543_v25 }
 0xe43   :  { %v545_v27 = vmul.f32 %v971_v24, %v544_v26 }
 0xe45   :  { %v546_v28 = vadd.f32 %v971_v24, %v545_v27 }
 0xe47   :  { %v550_v31 = vsel %vm549_vm1, %v971_v24, %v546_v28 }
 0xe48   :  { %v555_v36 = vsel %vm552_vm3, %v554_v32, %v550_v31  ;;  %v363_v31 = vsel %vm360_vm10, %v1225_v5, 0.0  ;;  %v726_v5 = vld [vmem:[%s1466_s2 + $0xe0] sm:$0xff] }
 0xe49   :  { %v558_v43 = vmul.f32 %v555_v36, %v1274_v42 }
 0xea6   :  { %v561_v33 = vpop.permute.xlu0 %560 }
 0xea7   :  { %v563_v40 = vmul.f32 %v561_v33, %v555_v36 }
 0xea9   :  { %565 = vrot.lane.b32.xlu1 %v563_v40, %s1040_s15  ;;  %v728_v40 = vld [vmem:[%s1466_s2 + $0xf0] sm:$0xff] }
 0xeae   :  { %v1281_v47 = vpop.permute.xlu0 %577 }
 0xeaf   :  { %vm579_vm5 = vcmp.eq.s32.totalorder %v1281_v47, 1  ;;  %v721_v47 = vld [vmem:[%s1466_s2 + $0xb8] sm:$0xff] }
 0xf1b   :  { %v566_v44 = vpop.permute.xlu1 %565 }
 0xf1c   :  { %v1277_v45 = vadd.f32 %v566_v44, %v558_v43  ;;  %v725_v43 = vld [vmem:[%s1466_s2 + $0xd8] sm:$0xff]  ;;  %v724_v44 = vld [vmem:[%s1466_s2 + $0xd0] sm:$0xff] }
 0xf1e   :  { %972 = vtanh.f32 %v1277_v45 }
 0xf24   :  { %v973_v46 = vpop.eup %972 }
 0xf25   :  { %571 = vrot.lane.b32.xlu2 %v973_v46, %s1039_s14  ;;  %v580_v46 = vsel %vm579_vm5, %v1277_v45, %v1274_v42  ;;  %v436_v42 = vsel %vm433_vm2, %v1245_v41, 0.0  ;;  %v722_v45 = vld [vmem:[%s1466_s2 + $0xc0] sm:$0xff] }
 0xf26   :  { %v718_v41 = vld [vmem:[%s1466_s2 + $0xa0] sm:$0xff] }
 0xf7f   :  { %v572_v48 = vpop.permute.xlu2 %571 }
 0xf80   :  { %v574_v49 = vmul.f32 %v572_v48, %v555_v36  ;;  %v729_v36 = vld [vmem:[%s1466_s2 + $0xf8] sm:$0xff] }
 0xf81   :  { %752 = vmatpush.msrb.mxu1 %v729_v36 }
 0xf82   :  { %v1286_v50 = vsel %vm579_vm5, %v574_v49, %v508_v12  ;;  %v582_v7 = vsel %vm579_vm5, %v574_v49, 0.0  ;;  %v698_v12 = vld [vmem:[%s1466_s2] sm:$0xff] }
 0xf83   :  { %586 = vrot.lane.b32.xlu1 %v1286_v50, %s1040_s15  ;;  %747 = vmatpush.msrb.mxu0 %v698_v12 }
 0xf84   :  { %753 = vmatpush.msrb.mxu1 %v728_v40 }
 0xf86   :  { %754 = vmatpush.msrb.mxu1 %v727_v2 }
 0xf88   :  { %755 = vmatpush.msrb.mxu1 %v726_v5 }
 0xf8a   :  { %756 = vmatpush.msrb.mxu1 %v725_v43 }
 0xf8b   :  { %667 = vrot.lane.b32.xlu1 %v144_v51, %s1040_s15  ;;  %v723_v51 = vld [vmem:[%s1466_s2 + $0xc8] sm:$0xff] }
 0xf8c   :  { %757 = vmatpush.msrb.mxu1 %v724_v44 }
 0xf8e   :  { %758 = vmatpush.msrb.mxu1 %v723_v51 }
 0xf90   :  { %759 = vmatpush.msrb.mxu1 %v722_v45 }
 0xf92   :  { %760 = vmatpush.msrb.mxu1 %v721_v47 }
 0xf93   :  { %675 = vrot.lane.b32.xlu1 %v290_v52, %s1042_s5 }
 0xf9b   :  { %683 = vrot.lane.b32.xlu1 %v509_v53, %s1039_s14 }
 0xff5   :  { %v587_v54 = vpop.permute.xlu1 %586 }
 0xff6   :  { %903 = vmatmul.msk.f32.vlgmr.msra.gmra.mxu3 %vm33_vm0, %v587_v54 }
 0xffd   :  { %v668_v24 = vpop.permute.xlu1 %667 }
0x1005   :  { %v676_v29 = vpop.permute.xlu1 %675 }
0x100d   :  { %v684_v57 = vpop.permute.xlu1 %683 }
0x1079   :  { %v607_v37 = vpop.f32.mrf.mxu3 }
0x107a   :  { %v610_v55 = vadd.f32 %v902_v34, %v607_v37  ;;  %v720_v37 = vld [vmem:[%s1466_s2 + $0xb0] sm:$0xff] }
0x107b   :  { %761 = vmatpush.msrb.mxu1 %v720_v37 }
0x107c   :  { %974 = vtanh.f32 %v610_v55  ;;  %v904_v1 = vmul.f32 -1.442695, %v610_v55  ;;  %v717_v55 = vld [vmem:[%s1466_s2 + $0x98] sm:$0xff] }
0x107d   :  { %762 = vmatpush.msrb.mxu1 %v719_v39 }
0x107e   :  { %976 = vpow2.f32 %v904_v1 }
0x107f   :  { %763 = vmatpush.msrb.mxu1 %v718_v41 }
0x1081   :  { %764 = vmatpush.msrb.mxu1 %v717_v55 }
0x1082   :  { %v975_v59 = vpop.eup %974 }
0x1083   :  { %633 = vrot.lane.b32.xlu2 %v975_v59, %s1039_s14  ;;  %765 = vmatpush.msrb.mxu1 %v716_v35 }
0x1084   :  { %v977_v3 = vpop.eup %976 }
0x1085   :  { %v614_v8 = vadd.f32 1.0, %v977_v3  ;;  %766 = vmatpush.msrb.mxu1 %v715_v38  ;;  %v792_v3 = vld [vmem:[%s1467_s3 + $0x8] sm:$0xff] }
0x1086   :  { %832 = vmatpush.msrb.mxu3 %v792_v3 }
0x1087   :  { %978 = vrcp.f32 %v614_v8  ;;  %v626_v20 = vand.u32 2147483648, %v614_v8  ;;  %vm620_vm4 = vweird.f32 %v614_v8  ;;  %v624_v21 = vand.u32 2147483647, %v614_v8  ;;  %767 = vmatpush.msrb.mxu1 %v714_v56 }
0x1089   :  { %v627_v23 = vor.u32 1.1754944e-38, %v626_v20  ;;  %vm625_vm8 = vcmp.eq.f32.partialorder %v624_v21, 8.507059e+37 }
0x108b   :  { %671 = vrot.lane.b32.xlu2 %v217_v0, %s1039_s14 }
0x108d   :  { %v979_v13 = vpop.eup %978 }
0x108e   :  { %v616_v15 = vmul.f32 %v979_v13, %v614_v8  ;;  %vm621_vm12 = vweird.f32 %v979_v13  ;;  %v731_v8 = vstv %s1468_s4 }
0x108f   :  { %vm622_vm7 = vmor %vm620_vm4, %vm621_vm12 }
0x1090   :  { %v617_v17 = vsub.f32 1.0, %v616_v15 }
0x1092   :  { %v618_v18 = vmul.f32 %v979_v13, %v617_v17 }
0x1093   :  { %650 = vperm.xlu2 %915, %v648_v6  }
0x1094   :  { %v619_v19 = vadd.f32 %v979_v13, %v618_v18 }
0x1096   :  { %v623_v22 = vsel %vm622_vm7, %v979_v13, %v619_v19 }
0x1097   :  { %v628_v26 = vsel %vm625_vm8, %v627_v23, %v623_v22 }
0x1098   :  { %v631_v49 = vmul.f32 %v628_v26, %v580_v46 }
0x109b   :  { %687 = vrot.lane.b32.xlu2 %v582_v7, %s1042_s5 }
0x10dd   :  { %v634_v25 = vpop.permute.xlu2 %633 }
0x10de   :  { %v636_v27 = vmul.f32 %v634_v25, %v628_v26 }
0x10e0   :  { %638 = vrot.lane.b32.xlu0 %v636_v27, %s1040_s15 }
0x10e5   :  { %v672_v28 = vpop.permute.xlu2 %671 }
0x10e6   :  { %v690_v30 = vsel %vm33_vm0, %v668_v24, %v672_v28 }
0x10e7   :  { %v692_v32 = vsel %vm691_vm9, %v690_v30, %v676_v29 }
0x10e8   :  { %v1369_v33 = vsel %vm693_vm11, %v692_v32, %v363_v31 }
0x10e9   :  { %748 = vmatmul.f32.vlgmr.msrb.gmra.mxu0 %v1369_v33 }
0x10ed   :  { %v651_v48 = vpop.permute.xlu2 %650 }
0x10ee   :  { %vm652_vm10 = vcmp.eq.s32.totalorder %v651_v48, 1 }
0x10f5   :  { %v688_v63 = vpop.permute.xlu2 %687 }
0x1152   :  { %v639_v52 = vpop.permute.xlu0 %638 }
0x1153   :  { %v641_v53 = vadd.f32 %v639_v52, %v631_v49 }
0x1155   :  { %980 = vtanh.f32 %v641_v53  ;;  %v653_v54 = vsel %vm652_vm10, %v641_v53, %v580_v46 }
0x1156   :  { %662 = vrot.lane.b32.xlu1 %v653_v54, %s1042_s5  ;;  %s866_s5 = sshll.u32 %s1472_s8, 4  ;;  %s867_s5 = int_to_ptr.hbm [resolvable:$true] %s866_s5 }
0x115b   :  { %v981_v34 = vpop.eup %980 }
0x115c   :  { %644 = vrot.lane.b32.xlu0 %v981_v34, %s1039_s14 }
0x1164   :  { %679 = vrot.lane.b32.xlu0 %v436_v42, %s1040_s15 }
0x1166   :  { %v749_v9 = vpop.f32.mrf.mxu0 }
0x1167   :  { %v750_v14 = vadd.f32 %v749_v9, %v731_v8 }
0x11c8   :  { %v663_v58 = vpop.permute.xlu1 %662 }
0x11c9   :  { %665 = vst.msk [vmem:[#allocation3] sm:$0xff] %vm33_vm0, %v663_v58 }
0x11ca   :  { %845 = vst.msk [vmem:[#allocation7] sm:$0xff] %vm33_vm0, %v663_v58 }
0x11cb   :  { %869 = dma.vmem_to_hbm [thread:$0]  %s865_s13, 128, %s867_s5, [#allocation8]  }
0x11ce   :  { %v645_v59 = vpop.permute.xlu0 %644 }
0x11cf   :  { %v647_v60 = vmul.f32 %v645_v59, %v628_v26 }
0x11d1   :  { %v654_v61 = vsel %vm652_vm10, %v647_v60, %v1286_v50  ;;  %v655_v4 = vsel %vm652_vm10, %v647_v60, 0.0  ;;  %v791_v50 = vld [vmem:[%s1467_s3] sm:$0xff]  ;;  %s1043_s3 = smov [#allocation5]  }
0x11d2   :  { %657 = vrot.lane.b32.xlu0 %v654_v61, %s1040_s15  ;;  %812 = vmatpush.msrb.mxu2 %v791_v50  ;;  %s853_s4 = sshll.u32 %s1043_s3, 4  ;;  %s854_s4 = int_to_ptr.vmem [resolvable:$true] %s853_s4 }
0x11d6   :  { %v680_v62 = vpop.permute.xlu0 %679 }
0x11d7   :  { %v695_v0 = vsel %vm33_vm0, %v680_v62, %v684_v57 }
0x11d8   :  { %v696_v6 = vsel %vm691_vm9, %v695_v0, %v688_v63 }
0x11d9   :  { %v697_v7 = vsel %vm693_vm11, %v696_v6, %v655_v4 }
0x11da   :  { %768 = vmatmul.f32.vlgmr.msrb.gmra.mxu1 %v697_v7 }
0x1244   :  { %v658_v1 = vpop.permute.xlu0 %657 }
0x1245   :  { %660 = vst.msk [vmem:[#allocation2] sm:$0xff] %vm33_vm0, %v658_v1 }
0x1246   :  { %844 = vst.msk [vmem:[#allocation5] sm:$0xff] %vm33_vm0, %v658_v1 }
0x1247   :  { %858 = dma.vmem_to_hbm [thread:$0]  %s854_s4, 128, %s856_s12, [#allocation6]  }
0x1257   :  { %v769_v16 = vpop.f32.mrf.mxu1 }
0x1258   :  { %v770_v10 = vadd.f32 %v769_v16, %v750_v14 }
0x125a   :  { %v905_v11 = vmul.f32 -1.442695, %v770_v10 }
0x125c   :  { %982 = vpow2.f32 %v905_v11 }
0x1262   :  { %v983_v12 = vpop.eup %982 }
0x1263   :  { %v775_v13 = vadd.f32 1.0, %v983_v12 }
0x1265   :  { %984 = vrcp.f32 %v775_v13  ;;  %v787_v19 = vand.u32 2147483648, %v775_v13  ;;  %v785_v21 = vand.u32 2147483647, %v775_v13  ;;  %vm781_vm2 = vweird.f32 %v775_v13 }
0x1267   :  { %v788_v23 = vor.u32 1.1754944e-38, %v787_v19  ;;  %vm786_vm15 = vcmp.eq.f32.partialorder %v785_v21, 8.507059e+37 }
0x126b   :  { %v985_v15 = vpop.eup %984 }
0x126c   :  { %v777_v17 = vmul.f32 %v985_v15, %v775_v13  ;;  %vm782_vm0 = vweird.f32 %v985_v15 }
0x126d   :  { %vm783_vm13 = vmor %vm781_vm2, %vm782_vm0 }
0x126e   :  { %v778_v18 = vsub.f32 1.0, %v777_v17 }
0x1270   :  { %v779_v20 = vmul.f32 %v985_v15, %v778_v18 }
0x1272   :  { %v780_v22 = vadd.f32 %v985_v15, %v779_v20 }
0x1274   :  { %v784_v24 = vsel %vm783_vm13, %v985_v15, %v780_v22 }
0x1275   :  { %v789_v25 = vsel %vm786_vm15, %v788_v23, %v784_v24 }
0x1276   :  { %906 = vmatmul.msk.f32.vlgmr.msrb.gmra.mxu2 %vm793_vm14, %v789_v25  ;;  %907 = vmatmul.msk.f32.vlgmr.msrb.gmra.mxu3 %vm793_vm14, %v789_v25 }
0x12f9   :  { %v814_v26 = vpop.f32.mrf.mxu2  ;;  %v834_v27 = vpop.f32.mrf.mxu3 }
0x12fa   :  { %v837_v28 = vmul.f32 %v814_v26, %v1369_v33  ;;  %v838_v29 = vmul.f32 %v834_v27, %v697_v7 }
0x12fc   :  { %839 = vst [vmem:[%s1470_s6] sm:$0xff] %v837_v28 }
0x12fd   :  { %840 = vst [vmem:[%s1470_s6 + $0x8] sm:$0xff] %v838_v29 }
0x12fe   :  { %1034 = dma.done.wait [#allocation6], 128  }
0x12ff   :  { %1035 = vsyncadd [#allocation6], 4294967168 }
0x1300   :  { %1036 = dma.done.wait [#allocation8], 128  }
0x1301   :  { %1037 = vsyncadd [#allocation8], 4294967168 }
0x1302   :  { %880 = vsyncpa [#allocation6], 1 }
0x1303   :  { %881 = vsyncpa [#allocation8], 1 }

</bundles_post_ra>
